<compile_context>
chip_gen: v6e
topology: v6e:2x2x1
jax: 0.10.0
libtpu: 0.0.40
codegen_flags: <defaults>
</compile_context>

<pallas_src>
import functools
import math

import jax
import jax.numpy as jnp
from jax.experimental import pallas as pl
from jax.experimental.pallas import tpu as pltpu


def _softplus(x):
    # Stable log1p(exp(x)); matches torch.log1p(torch.exp(x)) for typical rho.
    return jnp.maximum(x, 0.0) + jnp.log1p(jnp.exp(-jnp.abs(x)))


def _kl_elems(mu, sigma, prior_mu, prior_sigma):
    """Per-element KL(q || N(prior_mu, prior_sigma)) given mu_q and sigma_q."""
    mu = mu.astype(jnp.float32)
    sigma = sigma.astype(jnp.float32)
    log_sigma_p = jnp.float32(math.log(prior_sigma))
    inv_2sp2 = jnp.float32(1.0 / (2.0 * prior_sigma * prior_sigma))
    return (log_sigma_p - jnp.log(sigma)
            + (sigma * sigma + (mu - jnp.float32(prior_mu)) ** 2) * inv_2sp2
            - jnp.float32(0.5))


# ---------------------------------------------------------------------------
# Fused kernel: sample weights, accumulate x @ w.T over In tiles, fuse KL.
# Grid = (Out // tn, In // tk); the In axis (k) is the innermost reduction axis.
# ---------------------------------------------------------------------------
def _bayes_linear_kernel(*refs, sample, prior_mu, prior_sigma, n_w, n_b):
    if sample:
        (x_ref, wmu_ref, wrho_ref, weps_ref, bmu_ref, brho_ref, beps_ref,
         y_ref, kl_ref, acc_ref, klw_acc_ref) = refs
    else:
        (x_ref, wmu_ref, wrho_ref, bmu_ref, brho_ref,
         y_ref, kl_ref, acc_ref, klw_acc_ref) = refs
        weps_ref = beps_ref = None

    k = pl.program_id(1)
    nk = pl.num_programs(1)

    @pl.when(k == 0)
    def _init():
        acc_ref[...] = jnp.zeros_like(acc_ref)
        klw_acc_ref[...] = jnp.zeros_like(klw_acc_ref)

    wmu = wmu_ref[...]
    sigma_w = _softplus(wrho_ref[...])
    if sample:
        w = wmu + sigma_w * weps_ref[...]
    else:
        w = wmu

    # x:(B, tk) . w:(tn, tk) contracted over tk on both operands -> (B, tn).
    # (No explicit w.T: the MXU consumes the transposed contraction directly.)
    acc_ref[...] += jax.lax.dot_general(
        x_ref[...], w, (((1,), (1,)), ((), ())),
        preferred_element_type=jnp.float32)

    # Fused KL for this weight tile: reuse sigma_w already computed for sampling.
    klw_acc_ref[...] += jnp.sum(
        _kl_elems(wmu, sigma_w, prior_mu, prior_sigma), keepdims=True)

    @pl.when(k == nk - 1)
    def _finalize():
        bmu = bmu_ref[...]
        sigma_b = _softplus(brho_ref[...])
        if sample:
            b = bmu + sigma_b * beps_ref[...]
        else:
            b = bmu
        y_ref[...] = (acc_ref[...] + b.astype(jnp.float32)).astype(y_ref.dtype)

        # Per-Out-stripe KL contribution (already scaled so the wrapper just sums).
        kl_b_sum = jnp.sum(_kl_elems(bmu, sigma_b, prior_mu, prior_sigma),
                           keepdims=True)
        stripe_kl = (klw_acc_ref[...] * jnp.float32(1.0 / n_w)
                     + kl_b_sum * jnp.float32(1.0 / n_b))          # (1, 1)
        kl_ref[...] = jnp.broadcast_to(stripe_kl, kl_ref.shape)


def _pick_tile(dim, candidates):
    for t in candidates:
        if 0 < t <= dim and dim % t == 0:
            return t
    return dim   # fall back to the full (untiled) dimension


# ---------------------------------------------------------------------------
# Wrapper
# ---------------------------------------------------------------------------
def bayesian_linear_forward(x, weight_mu, weight_rho, bias_mu, bias_rho,
                            eps_w=None, eps_b=None, *,
                            prior_mu=0.0, prior_sigma=1.0,
                            deterministic=False,
                            tile_out=256, tile_in=512):
    """Returns (y, kl) matching BayesianLinear.forward."""
    B, In = x.shape
    Out = weight_mu.shape[0]

    # Lane-dense, MXU-friendly tiles (multiples of 128; 256+ preferred), falling
    # back to the full dimension so BlockSpecs always satisfy the (8, 128) rule.
    # TODO(synk): shapes not divisible by 128 currently fall back to a full-dim
    # (untiled) block along that axis instead of being padded/masked.
    tn = _pick_tile(Out, (tile_out, 512, 256, 128))
    tk = _pick_tile(In, (tile_in, 512, 256, 128))
    nj, nk = Out // tn, In // tk

    sample = not deterministic

    bias_mu2 = bias_mu.reshape(1, Out)
    bias_rho2 = bias_rho.reshape(1, Out)

    w_spec = pl.BlockSpec((tn, tk), lambda j, k: (j, k))
    b_spec = pl.BlockSpec((1, tn), lambda j, k: (0, j))

    in_specs = [pl.BlockSpec((B, tk), lambda j, k: (0, k)),   # x
                w_spec, w_spec]                               # weight_mu, weight_rho
    args = [x, weight_mu, weight_rho]
    if sample:
        in_specs.append(w_spec)                               # eps_w
        args.append(eps_w)
    in_specs += [b_spec, b_spec]                              # bias_mu, bias_rho
    args += [bias_mu2, bias_rho2]
    if sample:
        in_specs.append(b_spec)                               # eps_b
        args.append(eps_b.reshape(1, Out))

    kernel = functools.partial(
        _bayes_linear_kernel,
        sample=sample,
        prior_mu=float(prior_mu), prior_sigma=float(prior_sigma),
        n_w=Out * In, n_b=Out)

    y, kl_parts = pl.pallas_call(
        kernel,
        out_shape=(
            jax.ShapeDtypeStruct((B, Out), x.dtype),
            # One KL partial per Out-stripe, padded to a full (8, 128) tile so the
            # output block is layout-compliant and lane-dense.
            jax.ShapeDtypeStruct((nj, 8, 128), jnp.float32),
        ),
        grid_spec=pltpu.PrefetchScalarGridSpec(
            num_scalar_prefetch=0,
            grid=(nj, nk),
            in_specs=in_specs,
            out_specs=(
                pl.BlockSpec((B, tn), lambda j, k: (0, j)),
                pl.BlockSpec((1, 8, 128), lambda j, k: (j, 0, 0)),
            ),
            scratch_shapes=[
                pltpu.VMEM((B, tn), jnp.float32),   # y accumulator
                pltpu.VMEM((1, 1), jnp.float32),    # weight-KL stripe accumulator
            ]),
        compiler_params=pltpu.CompilerParams(
            dimension_semantics=("parallel", "arbitrary")),
    )(*args)

    # Each stripe's (8,128) tile is a broadcast of one scalar; reduce the nj scalars.
    kl = jnp.sum(kl_parts[:, 0, 0])
    return y, kl


# ---------------------------------------------------------------------------
# Pure-JAX reference for a sanity check.
# ---------------------------------------------------------------------------
def _reference(x, weight_mu, weight_rho, bias_mu, bias_rho, eps_w, eps_b,
               prior_mu=0.0, prior_sigma=1.0):
    sigma_w = jnp.log1p(jnp.exp(weight_rho))
    sigma_b = jnp.log1p(jnp.exp(bias_rho))
    w = weight_mu + sigma_w * eps_w
    b = bias_mu + sigma_b * eps_b
    y = jnp.dot(x, w.T, precision=jax.lax.Precision.HIGHEST) + b

    def kl_mean(mu_q, rho_q):
        sigma_q = jnp.log1p(jnp.exp(rho_q))
        kl = (jnp.log(prior_sigma) - jnp.log(sigma_q)
              + (sigma_q ** 2 + (mu_q - prior_mu) ** 2) / (2 * prior_sigma ** 2)
              - 0.5)
        return kl.mean()

    kl = kl_mean(weight_mu, weight_rho) + kl_mean(bias_mu, bias_rho)
    return y, kl


if __name__ == "__main__":
    # Small shapes, but tiled with 128-sized blocks so the kernel exercises a real
    # (2, 2) grid with reduction accumulation and per-stripe KL partials.
    B, In, Out = 8, 256, 256
    prior_mu, prior_sigma = 0.0, 1.0

    key = jax.random.PRNGKey(0)
    k_x, k_wmu, k_wrho, k_bmu, k_brho, k_ew, k_eb = jax.random.split(key, 7)

    x = jax.random.normal(k_x, (B, In), dtype=jnp.float32)
    weight_mu = 0.0 + 0.5 * jax.random.normal(k_wmu, (Out, In), dtype=jnp.float32)
    weight_rho = -5.0 + 0.5 * jax.random.normal(k_wrho, (Out, In), dtype=jnp.float32)
    bias_mu = 0.0 + 0.5 * jax.random.normal(k_bmu, (Out,), dtype=jnp.float32)
    bias_rho = -5.0 + 0.5 * jax.random.normal(k_brho, (Out,), dtype=jnp.float32)
    eps_w = jax.random.normal(k_ew, (Out, In), dtype=jnp.float32)
    eps_b = jax.random.normal(k_eb, (Out,), dtype=jnp.float32)

    # Stochastic forward (reparameterized sample) + fused KL.
    y, kl = bayesian_linear_forward(
        x, weight_mu, weight_rho, bias_mu, bias_rho, eps_w, eps_b,
        prior_mu=prior_mu, prior_sigma=prior_sigma,
        deterministic=False, tile_out=128, tile_in=128)

    # Deterministic forward (w = mu, b = mu); eps is never read from HBM.
    y_det, kl_det = bayesian_linear_forward(
        x, weight_mu, weight_rho, bias_mu, bias_rho,
        prior_mu=prior_mu, prior_sigma=prior_sigma,
        deterministic=True, tile_out=128, tile_in=128)

    jax.block_until_ready((y, kl, y_det, kl_det))

    y_ref, kl_ref = _reference(x, weight_mu, weight_rho, bias_mu, bias_rho,
                               eps_w, eps_b, prior_mu, prior_sigma)
    y_det_ref, _ = _reference(x, weight_mu, weight_rho, bias_mu, bias_rho,
                              jnp.zeros_like(eps_w), jnp.zeros_like(eps_b),
                              prior_mu, prior_sigma)

    assert y.shape == (B, Out)
    assert jnp.allclose(y, y_ref, atol=1e-3, rtol=1e-3), \
        float(jnp.max(jnp.abs(y - y_ref)))
    assert jnp.allclose(kl, kl_ref, atol=1e-4, rtol=1e-4), (float(kl), float(kl_ref))
    assert jnp.allclose(y_det, y_det_ref, atol=1e-3, rtol=1e-3), \
        float(jnp.max(jnp.abs(y_det - y_det_ref)))
    assert jnp.allclose(kl_det, kl_ref, atol=1e-4, rtol=1e-4)

    print("KERNEL_OK")
</pallas_src>

<mosaic_0001>
module attributes {stable_mosaic.version = 11 : i64} {
  func.func @_bayes_linear_kernel(%arg0: i32, %arg1: i32, %arg2: memref<8x128xf32, #tpu.memory_space<vmem>>, %arg3: memref<128x128xf32, #tpu.memory_space<vmem>>, %arg4: memref<128x128xf32, #tpu.memory_space<vmem>>, %arg5: memref<128x128xf32, #tpu.memory_space<vmem>>, %arg6: memref<1x128xf32, #tpu.memory_space<vmem>>, %arg7: memref<1x128xf32, #tpu.memory_space<vmem>>, %arg8: memref<1x128xf32, #tpu.memory_space<vmem>>, %arg9: memref<8x128xf32, #tpu.memory_space<vmem>>, %arg10: memref<1x8x128xf32, #tpu.memory_space<vmem>>, %arg11: memref<8x128xf32, #tpu.memory_space<vmem>>, %arg12: memref<1x1xf32, #tpu.memory_space<vmem>>) attributes {dimension_semantics = [#tpu.dimension_semantics<parallel>, #tpu.dimension_semantics<arbitrary>], iteration_bounds = array<i64: 2, 2>, scalar_prefetch = 0 : i64, scratch_operands = 2 : i64, tpu.core_type = #tpu.core_type<tc>, window_params = [{transform_indices = @transform_0, window_bounds = array<i64: 8, 128>}, {transform_indices = @transform_1, window_bounds = array<i64: 128, 128>}, {transform_indices = @transform_2, window_bounds = array<i64: 128, 128>}, {transform_indices = @transform_3, window_bounds = array<i64: 128, 128>}, {transform_indices = @transform_4, window_bounds = array<i64: 1, 128>}, {transform_indices = @transform_5, window_bounds = array<i64: 1, 128>}, {transform_indices = @transform_6, window_bounds = array<i64: 1, 128>}, {transform_indices = @transform_7, window_bounds = array<i64: 8, 128>}, {transform_indices = @transform_8, window_bounds = array<i64: 1, 8, 128>}]} {
    %c0_i32 = arith.constant 0 : i32
    %0 = arith.cmpi eq, %arg1, %c0_i32 : i32
    %1 = arith.extui %0 : i1 to i32
    %c0_i32_0 = arith.constant 0 : i32
    %2 = arith.cmpi ne, %1, %c0_i32_0 : i32
    scf.if %2 {
      %cst_24 = arith.constant 0.000000e+00 : f32
      %45 = vector.broadcast %cst_24 : f32 to vector<8x128xf32>
      %c0_25 = arith.constant 0 : index
      %c0_26 = arith.constant 0 : index
      %46 = vector.load %arg11[%c0_25, %c0_26] : memref<8x128xf32, #tpu.memory_space<vmem>>, vector<8x128xf32>
      tpu.vector_store %arg11[%c0_25, %c0_26], %45 {strides = array<i32>} : memref<8x128xf32, #tpu.memory_space<vmem>>, vector<8x128xf32>,
      %cst_27 = arith.constant 0.000000e+00 : f32
      %47 = vector.broadcast %cst_27 : f32 to vector<1x1xf32>
      %c0_28 = arith.constant 0 : index
      %c0_29 = arith.constant 0 : index
      %48 = vector.load %arg12[%c0_28, %c0_29] : memref<1x1xf32, #tpu.memory_space<vmem>>, vector<1x1xf32>
      tpu.vector_store %arg12[%c0_28, %c0_29], %47 {strides = array<i32>} : memref<1x1xf32, #tpu.memory_space<vmem>>, vector<1x1xf32>,
    } else {
    }
    %c0 = arith.constant 0 : index
    %c0_1 = arith.constant 0 : index
    %3 = vector.load %arg3[%c0, %c0_1] : memref<128x128xf32, #tpu.memory_space<vmem>>, vector<128x128xf32>
    %c0_2 = arith.constant 0 : index
    %c0_3 = arith.constant 0 : index
    %4 = vector.load %arg4[%c0_2, %c0_3] : memref<128x128xf32, #tpu.memory_space<vmem>>, vector<128x128xf32>
    %cst = arith.constant 0.000000e+00 : f32
    %5 = vector.broadcast %cst : f32 to vector<128x128xf32>
    %6 = arith.maximumf %4, %5 : vector<128x128xf32>
    %7 = math.absf %4 : vector<128x128xf32>
    %cst_4 = arith.constant 0.000000e+00 : f32
    %8 = vector.broadcast %cst_4 : f32 to vector<128x128xf32>
    %9 = arith.subf %8, %7 : vector<128x128xf32>
    %10 = math.exp %9 : vector<128x128xf32>
    %11 = math.log1p %10 : vector<128x128xf32>
    %12 = arith.addf %6, %11 : vector<128x128xf32>
    %c0_5 = arith.constant 0 : index
    %c0_6 = arith.constant 0 : index
    %13 = vector.load %arg5[%c0_5, %c0_6] : memref<128x128xf32, #tpu.memory_space<vmem>>, vector<128x128xf32>
    %14 = arith.mulf %12, %13 : vector<128x128xf32>
    %15 = arith.addf %3, %14 : vector<128x128xf32>
    %c0_7 = arith.constant 0 : index
    %c0_8 = arith.constant 0 : index
    %16 = vector.load %arg11[%c0_7, %c0_8] : memref<8x128xf32, #tpu.memory_space<vmem>>, vector<8x128xf32>
    %c0_9 = arith.constant 0 : index
    %c0_10 = arith.constant 0 : index
    %17 = vector.load %arg2[%c0_9, %c0_10] : memref<8x128xf32, #tpu.memory_space<vmem>>, vector<8x128xf32>
    %cst_11 = arith.constant dense<0.000000e+00> : vector<8x128xf32>
    %18 = tpu.matmul %17, %15, %cst_11 {dimension_numbers = #tpu.dot_dimension_numbers<[1], [1], [0], [0], [0, 0, 1, 0], [], []>} : vector<8x128xf32>, vector<128x128xf32>, vector<8x128xf32> -> vector<8x128xf32>
    %19 = arith.addf %16, %18 : vector<8x128xf32>
    %c0_12 = arith.constant 0 : index
    %c0_13 = arith.constant 0 : index
    %20 = vector.load %arg11[%c0_12, %c0_13] : memref<8x128xf32, #tpu.memory_space<vmem>>, vector<8x128xf32>
    tpu.vector_store %arg11[%c0_12, %c0_13], %19 {strides = array<i32>} : memref<8x128xf32, #tpu.memory_space<vmem>>, vector<8x128xf32>,
    %c0_14 = arith.constant 0 : index
    %c0_15 = arith.constant 0 : index
    %21 = vector.load %arg12[%c0_14, %c0_15] : memref<1x1xf32, #tpu.memory_space<vmem>>, vector<1x1xf32>
    %22 = math.log %12 : vector<128x128xf32>
    %cst_16 = arith.constant 0.000000e+00 : f32
    %23 = vector.broadcast %cst_16 : f32 to vector<128x128xf32>
    %24 = arith.subf %23, %22 : vector<128x128xf32>
    %25 = arith.mulf %12, %12 : vector<128x128xf32>
    %cst_17 = arith.constant 0.000000e+00 : f32
    %26 = vector.broadcast %cst_17 : f32 to vector<128x128xf32>
    %27 = arith.subf %3, %26 : vector<128x128xf32>
    %28 = arith.mulf %27, %27 : vector<128x128xf32>
    %29 = arith.addf %25, %28 : vector<128x128xf32>
    %cst_18 = arith.constant 5.000000e-01 : f32
    %30 = vector.broadcast %cst_18 : f32 to vector<128x128xf32>
    %31 = arith.mulf %29, %30 : vector<128x128xf32>
    %32 = arith.addf %24, %31 : vector<128x128xf32>
    %cst_19 = arith.constant 5.000000e-01 : f32
    %33 = vector.broadcast %cst_19 : f32 to vector<128x128xf32>
    %34 = arith.subf %32, %33 : vector<128x128xf32>
    %35 = vector.shape_cast %34 : vector<128x128xf32> to vector<1x128x128xf32>
    %cst_20 = arith.constant dense<0.000000e+00> : vector<1xf32>
    %36 = vector.multi_reduction <add>, %35, %cst_20 [1, 2] : vector<1x128x128xf32> to vector<1xf32>
    %37 = vector.shape_cast %36 : vector<1xf32> to vector<1x1x1xf32>
    %38 = vector.extract %37[0, 0, 0] : f32 from vector<1x1x1xf32>
    %39 = vector.broadcast %38 : f32 to vector<1x1xf32>
    %40 = arith.addf %21, %39 : vector<1x1xf32>
    %c0_21 = arith.constant 0 : index
    %c0_22 = arith.constant 0 : index
    %41 = vector.load %arg12[%c0_21, %c0_22] : memref<1x1xf32, #tpu.memory_space<vmem>>, vector<1x1xf32>
    tpu.vector_store %arg12[%c0_21, %c0_22], %40 {strides = array<i32>} : memref<1x1xf32, #tpu.memory_space<vmem>>, vector<1x1xf32>,
    %c1_i32 = arith.constant 1 : i32
    %42 = arith.cmpi eq, %arg1, %c1_i32 : i32
    %43 = arith.extui %42 : i1 to i32
    %c0_i32_23 = arith.constant 0 : i32
    %44 = arith.cmpi ne, %43, %c0_i32_23 : i32
    scf.if %44 {
      %c0_24 = arith.constant 0 : index
      %c0_25 = arith.constant 0 : index
      %45 = vector.load %arg6[%c0_24, %c0_25] : memref<1x128xf32, #tpu.memory_space<vmem>>, vector<1x128xf32>
      %c0_26 = arith.constant 0 : index
      %c0_27 = arith.constant 0 : index
      %46 = vector.load %arg7[%c0_26, %c0_27] : memref<1x128xf32, #tpu.memory_space<vmem>>, vector<1x128xf32>
      %cst_28 = arith.constant 0.000000e+00 : f32
      %47 = vector.broadcast %cst_28 : f32 to vector<1x128xf32>
      %48 = arith.maximumf %46, %47 : vector<1x128xf32>
      %49 = math.absf %46 : vector<1x128xf32>
      %cst_29 = arith.constant 0.000000e+00 : f32
      %50 = vector.broadcast %cst_29 : f32 to vector<1x128xf32>
      %51 = arith.subf %50, %49 : vector<1x128xf32>
      %52 = math.exp %51 : vector<1x128xf32>
      %53 = math.log1p %52 : vector<1x128xf32>
      %54 = arith.addf %48, %53 : vector<1x128xf32>
      %c0_30 = arith.constant 0 : index
      %c0_31 = arith.constant 0 : index
      %55 = vector.load %arg8[%c0_30, %c0_31] : memref<1x128xf32, #tpu.memory_space<vmem>>, vector<1x128xf32>
      %56 = arith.mulf %54, %55 : vector<1x128xf32>
      %57 = arith.addf %45, %56 : vector<1x128xf32>
      %c0_32 = arith.constant 0 : index
      %c0_33 = arith.constant 0 : index
      %58 = vector.load %arg11[%c0_32, %c0_33] : memref<8x128xf32, #tpu.memory_space<vmem>>, vector<8x128xf32>
      %59 = vector.broadcast %57 : vector<1x128xf32> to vector<8x128xf32>
      %60 = arith.addf %58, %59 : vector<8x128xf32>
      %c0_34 = arith.constant 0 : index
      %c0_35 = arith.constant 0 : index
      %61 = vector.load %arg9[%c0_34, %c0_35] : memref<8x128xf32, #tpu.memory_space<vmem>>, vector<8x128xf32>
      tpu.vector_store %arg9[%c0_34, %c0_35], %60 {strides = array<i32>} : memref<8x128xf32, #tpu.memory_space<vmem>>, vector<8x128xf32>,
      %62 = math.log %54 : vector<1x128xf32>
      %cst_36 = arith.constant 0.000000e+00 : f32
      %63 = vector.broadcast %cst_36 : f32 to vector<1x128xf32>
      %64 = arith.subf %63, %62 : vector<1x128xf32>
      %65 = arith.mulf %54, %54 : vector<1x128xf32>
      %cst_37 = arith.constant 0.000000e+00 : f32
      %66 = vector.broadcast %cst_37 : f32 to vector<1x128xf32>
      %67 = arith.subf %45, %66 : vector<1x128xf32>
      %68 = arith.mulf %67, %67 : vector<1x128xf32>
      %69 = arith.addf %65, %68 : vector<1x128xf32>
      %cst_38 = arith.constant 5.000000e-01 : f32
      %70 = vector.broadcast %cst_38 : f32 to vector<1x128xf32>
      %71 = arith.mulf %69, %70 : vector<1x128xf32>
      %72 = arith.addf %64, %71 : vector<1x128xf32>
      %cst_39 = arith.constant 5.000000e-01 : f32
      %73 = vector.broadcast %cst_39 : f32 to vector<1x128xf32>
      %74 = arith.subf %72, %73 : vector<1x128xf32>
      %75 = vector.shape_cast %74 : vector<1x128xf32> to vector<1x1x128xf32>
      %cst_40 = arith.constant dense<0.000000e+00> : vector<1xf32>
      %76 = vector.multi_reduction <add>, %75, %cst_40 [1, 2] : vector<1x1x128xf32> to vector<1xf32>
      %77 = vector.shape_cast %76 : vector<1xf32> to vector<1x1x1xf32>
      %78 = vector.extract %77[0, 0, 0] : f32 from vector<1x1x1xf32>
      %79 = vector.broadcast %78 : f32 to vector<1x1xf32>
      %c0_41 = arith.constant 0 : index
      %c0_42 = arith.constant 0 : index
      %80 = vector.load %arg12[%c0_41, %c0_42] : memref<1x1xf32, #tpu.memory_space<vmem>>, vector<1x1xf32>
      %cst_43 = arith.constant 1.52587891E-5 : f32
      %81 = vector.broadcast %cst_43 : f32 to vector<1x1xf32>
      %82 = arith.mulf %80, %81 : vector<1x1xf32>
      %cst_44 = arith.constant 3.906250e-03 : f32
      %83 = vector.broadcast %cst_44 : f32 to vector<1x1xf32>
      %84 = arith.mulf %79, %83 : vector<1x1xf32>
      %85 = arith.addf %82, %84 : vector<1x1xf32>
      %86 = vector.shape_cast %85 : vector<1x1xf32> to vector<1x1x1xf32>
      %87 = vector.broadcast %86 : vector<1x1x1xf32> to vector<1x8x128xf32>
      %c0_45 = arith.constant 0 : index
      %c0_46 = arith.constant 0 : index
      %c0_47 = arith.constant 0 : index
      %88 = vector.load %arg10[%c0_45, %c0_46, %c0_47] : memref<1x8x128xf32, #tpu.memory_space<vmem>>, vector<1x8x128xf32>
      tpu.vector_store %arg10[%c0_45, %c0_46, %c0_47], %87 {strides = array<i32>} : memref<1x8x128xf32, #tpu.memory_space<vmem>>, vector<1x8x128xf32>,
    } else {
    }
    return
  }
  func.func @transform_0(%arg0: i32, %arg1: i32) -> (i32, i32) {
    %c0_i32 = arith.constant 0 : i32
    %c0_i32_0 = arith.constant 0 : i32
    return %c0_i32, %arg1 : i32, i32
  }
  func.func @transform_1(%arg0: i32, %arg1: i32) -> (i32, i32) {
    %c0_i32 = arith.constant 0 : i32
    return %arg0, %arg1 : i32, i32
  }
  func.func @transform_2(%arg0: i32, %arg1: i32) -> (i32, i32) {
    %c0_i32 = arith.constant 0 : i32
    return %arg0, %arg1 : i32, i32
  }
  func.func @transform_3(%arg0: i32, %arg1: i32) -> (i32, i32) {
    %c0_i32 = arith.constant 0 : i32
    return %arg0, %arg1 : i32, i32
  }
  func.func @transform_4(%arg0: i32, %arg1: i32) -> (i32, i32) {
    %c0_i32 = arith.constant 0 : i32
    %c0_i32_0 = arith.constant 0 : i32
    return %c0_i32, %arg0 : i32, i32
  }
  func.func @transform_5(%arg0: i32, %arg1: i32) -> (i32, i32) {
    %c0_i32 = arith.constant 0 : i32
    %c0_i32_0 = arith.constant 0 : i32
    return %c0_i32, %arg0 : i32, i32
  }
  func.func @transform_6(%arg0: i32, %arg1: i32) -> (i32, i32) {
    %c0_i32 = arith.constant 0 : i32
    %c0_i32_0 = arith.constant 0 : i32
    return %c0_i32, %arg0 : i32, i32
  }
  func.func @transform_7(%arg0: i32, %arg1: i32) -> (i32, i32) {
    %c0_i32 = arith.constant 0 : i32
    %c0_i32_0 = arith.constant 0 : i32
    return %c0_i32, %arg0 : i32, i32
  }
  func.func @transform_8(%arg0: i32, %arg1: i32) -> (i32, i32, i32) {
    %c0_i32 = arith.constant 0 : i32
    %c0_i32_0 = arith.constant 0 : i32
    %c0_i32_1 = arith.constant 0 : i32
    return %arg0, %c0_i32, %c0_i32_0 : i32, i32, i32
  }
}

</mosaic_0001>

<bundles_post_ra>
// kernel: tpu_custom_call.1
= control target key start
LH: loop header
LB: loop body
LE: loop exit
PB: predicated region body
PF: predicated region fallthrough
CT: control target
= control target key end

     0   :  { %s3002_s0 = inlined_call_operand.hbm [shape: f32[8,256], index: 0, kind: input, shape index: {}]   ;;  %s3003_s1 = inlined_call_operand.hbm [shape: f32[256,256], index: 1, kind: input, shape index: {}]   ;;  %s3004_s2 = inlined_call_operand.hbm [shape: f32[256,256], index: 2, kind: input, shape index: {}]   ;;  %s3005_s3 = inlined_call_operand.hbm [shape: f32[256,256], index: 3, kind: input, shape index: {}]   ;;  %s3006_s4 = inlined_call_operand.vmem [shape: f32[1,256], index: 4, kind: input, shape index: {}]   ;;  %s3007_s5 = inlined_call_operand.vmem [shape: f32[1,256], index: 5, kind: input, shape index: {}]   ;;  %s3008_s6 = inlined_call_operand.vmem [shape: f32[1,256], index: 6, kind: input, shape index: {}]   ;;  %s3009_s7 = inlined_call_operand.hbm [shape: f32[8,256], index: 7, kind: output, shape index: {0}]   ;;  %s3010_s8 = inlined_call_operand.hbm [shape: f32[2,8,128], index: 8, kind: output, shape index: {1}]  }
   0x1   :  { %3034 = sst [smem:[#allocation34_spill]] %s3002_s0 }
   0x2   :  { %3035 = sst [smem:[#allocation35_spill]] %s3003_s1 }
   0x3   :  { %3036 = sst [smem:[#allocation36_spill]] %s3006_s4 }
   0x4   :  { %3037 = sst [smem:[#allocation37_spill]] %s3007_s5 }
   0x5   :  { %3038 = sst [smem:[#allocation38_spill]] %s3008_s6 }
   0x6   :  { %3039 = sst [smem:[#allocation39_spill]] %s3009_s7 }
   0x7   :  { %3040 = sst [smem:[#allocation40_spill]] %s3010_s8 }
   0x8   :  { %14 = vsyncpa [#allocation5], 0 }
   0x9   :  { %16 = vsyncpa [#allocation5 + $0x1], 0 }
   0xa   :  { %17 = vsyncpa [#allocation8], 0 }
   0xb   :  { %19 = vsyncpa [#allocation8 + $0x1], 0 }
   0xc   :  { %20 = vsyncpa [#allocation11], 0 }
   0xd   :  { %22 = vsyncpa [#allocation11 + $0x1], 0 }
   0xe   :  { %23 = vsyncpa [#allocation6], 0 }
   0xf   :  { %25 = vsyncpa [#allocation6 + $0x1], 0 }
  0x10   :  { %26 = vsyncpa [#allocation14], 0 }
  0x11   :  { %28 = vsyncpa [#allocation14 + $0x1], 0  ;;  %s2123_s27 = smov 0   ;;  %s2125_s28 = smov 0  }
  0x12   :  { %s2127_s29 = smov 0   ;;  %s2129_s30 = smov 0  }
  0x13   :  { %s2131_s9 = smov 0   ;;  %s2133_s10 = smov 0  }
  0x14   :  { %s2135_s11 = smov 0   ;;  %s2137_s12 = smov 0  }
  0x15   :  { %s2139_s13 = smov 0   ;;  %s2141_s14 = smov 0  }
  0x16   :  { %s2143_s15 = smov 0   ;;  %s2145_s16 = smov 0  }
  0x17   :  { %s2147_s17 = smov 0   ;;  %s2149_s18 = smov 0  }
  0x18 LB: > { %3041 = sst [smem:[#allocation20_spill]] %s2019_s29  ;;  %p61_p0 = scmp.eq.s32.totalorder %s2063_s18, 0  ;;  %s2063_s18 = sphi %s2149_s18, %s34_s18   ;;  %s2059_s17 = sphi %s2147_s17, %s3129_s17   ;;  %s2055_s16 = sphi %s2145_s16, %s3136_s16   ;;  %s2051_s15 = sphi %s2143_s15, %s3127_s15   ;;  %s2047_s14 = sphi %s2141_s14, %s3126_s14   ;;  %s2043_s13 = sphi %s2139_s13, %s3125_s13   ;;  %s2039_s12 = sphi %s2137_s12, %s3135_s12   ;;  %s2035_s11 = sphi %s2135_s11, %s3134_s11   ;;  %s2031_s10 = sphi %s2133_s10, %s3133_s10   ;;  %s2027_s9 = sphi %s2131_s9, %s3132_s9   ;;  %s2023_s30 = sphi %s2129_s30, %s3122_s30   ;;  %s2019_s29 = sphi %s2127_s29, %s3121_s29   ;;  %s2015_s28 = sphi %s2125_s28, %s3131_s28   ;;  %s2011_s27 = sphi %s2123_s27, %s3130_s27  }
  0x19   : > { %3042 = sst [smem:[#allocation21_spill]] %s2027_s9  ;;  %p88_p1 = scmp.ne.s32.totalorder %s2031_s10, %s2027_s9 }
  0x1a   : > { %3043 = sst [smem:[#allocation22_spill]] %s2043_s13  ;;  %p1545_p2 = scmp.lt.s32.totalorder %s2063_s18, 4 }
  0x1b   : > { %3044 = sst [smem:[#allocation23_spill]] %s2047_s14  ;;  %p90_p3 = por %p88_p1, %p61_p0 }
  0x1c   : > { %3045 = sst [smem:[#allocation24_spill]] %s2051_s15  ;;  %s322_s21 = sand.u32 1, %s2063_s18  }
  0x1d   : > { %3046 = sst [smem:[#allocation25_spill]] %s2055_s16  ;;  %s3013_s22 = sand.u32 1, %s2031_s10  }
  0x1e   : > { %3047 = sst [smem:[#allocation26_spill]] %s2059_s17  ;;  %s2205_s23 = sshll.u32 %s3013_s22, 7 }
  0x1f   : > { %s1454_s24 = sshll.u32 %s2059_s17, 5  ;;  %s326_s19 = scalar_lea.vmem [#allocation7], %s2205_s23 }
  0x20   : > { %s332_s25 = sadd.s32 %s2055_s16, %s1454_s24  ;;  %s335_s8 = sshll.u32 %s326_s19, 4  ;;  %s336_s8 = int_to_ptr.vmem [resolvable:$true] %s335_s8 }
  0x21   : > { %s2209_s26 = sshll.u32 %s332_s25, 7  ;;  %s3048_s1 = sld [smem:[#allocation35_spill]] }
  0x22   : > { %p2218_p4 = pnand %p1545_p2, %p90_p3  ;;  %p1422_p5 = scmp.ge.s32.totalorder %s2063_s18, 1 }
  0x23   : > { %s2223_s22 = scalar_lea.sflag [#allocation8], %s322_s21  ;;  %s1782_s24 = scalar_lea.vmem %s336_s8, 2048 }
  0x24   : > { %p3026_p6 = pneg %p2218_p4  ;;  %p1783_p7 = scmp.ne.s32.totalorder %s336_s8, %s1782_s24 }
  0x25   : > { %s2065_s7 = smov [#allocation7]  }
  0x26   : > { %p1785_p8 = pnand %p1783_p7, %p3026_p6  ;;  %s1787_s14 = sshll.u32 %s2065_s7, 4  ;;  %s1788_s14 = int_to_ptr.vmem [resolvable:$false] %s1787_s14 }
  0x27   : > { %s334_s20 = scalar_lea.hbm %s3048_s1, %s2209_s26  ;;  %s1789_s19 = scalar_lea.vmem %s1788_s14, 4096 }
  0x28   : > { %p1786_p9 = pneg %p1785_p8  ;;  %p1790_p10 = scmp.lt.s32.totalorder %s336_s8, %s1788_s14 }
  0x29   : > { %p1791_p11 = scmp.lt.s32.totalorder %s1789_s19, %s1782_s24 }
  0x2b   : > { %p1792_p12 = por %p1791_p11, %p1790_p10 }
  0x2d   : > { %p1793_p13 = pnand %p1792_p12, %p1786_p9 }
  0x2f   : > { %1796 = shalt.err (!%p1793_p13)
}
  0x30   : > { %s3014_s25 = smov 256   ;;  %s3016_s21 = smov 128  }
  0x31   : > { %s3018_s24 = smov 8   ;;  %p407_p1 = scmp.lt.s32.totalorder %s2063_s18, 5 }
  0x32   : > { %1531 = dma.hbm_to_vmem [thread:$0]  (!%p2218_p4), %s334_s20, 2048, %s336_s8, %s2223_s22, %s3014_s25, %s3016_s21, %s3018_s24  }
  0x33   : > { %p2239_p3 = pnand %p1422_p5, %p407_p1  ;;  %s2244_s14 = sadd.s32 4294967295, %s2063_s18  }
  0x34   : > { %s1405_s19 = sadd.s32 4294967294, %s2063_s18   ;;  %s43_s1 = sadd.s32 1, %s2055_s16 }
  0x35   : > { %s53_s5 = sadd.s32 1, %s2043_s13  ;;  %p44_p7 = scmp.ge.s32.totalorder %s43_s1, 2 }
  0x36   : > { %p60_p8 = scmp.ne.s32.totalorder %s2043_s13, %s2039_s12  ;;  %p66_p9 = scmp.ne.s32.totalorder %s2039_s12, %s2035_s11 }
  0x37   : > { %p67_p10 = scmp.eq.s32.totalorder %s2244_s14, 0  ;;  %s3138_s1 = smov (%p44_p7, %s43_s1), 0 }
  0x38   : > { %3051 = sst [smem:[#allocation27_spill]] %s3138_s1  ;;  %s3052_s8 = sadd.s32 1, %s2059_s17 }
  0x39   : > { %s3140_s8 = smov (!%p44_p7, %s3052_s8), %s2059_s17  ;;  %s50_s20 = ssub.s32 %s2055_s16, %s3138_s1 }
  0x3a   : > { %p2263_p5 = por %p61_p0, %p60_p8  ;;  %p48_p11 = scmp.ge.s32.totalorder %s3140_s8, 2 }
  0x3b   : > { %p51_p12 = scmp.eq.s32.totalorder %s50_s20, 0  ;;  %p2267_p13 = por %p67_p10, %p66_p9 }
  0x3c   : > { %p94_p1 = scmp.ne.s32.totalorder %s2027_s9, %s2023_s30  ;;  %s3142_s8 = smov (%p48_p11, %s3140_s8), 0 }
  0x3d   : > { %s3054_s11 = scalar_select %p2267_p13, 1, 0 }
  0x3e   : > { %3056 = sst [smem:[#allocation29_spill]] %s3142_s8  ;;  %s76_s24 = ssub.s32 %s2059_s17, %s3142_s8 }
  0x3f   : > { %3055 = sst [smem:[#allocation28_spill]] %s3054_s11  ;;  %p2280_p0 = por %p94_p1, %p67_p10 }
  0x40   : > { %s2276_s21 = scalar_select %p51_p12, %s2043_s13, %s53_s5  }
  0x41   : > { %s78_s4 = sor.u32 %s76_s24, %s50_s20  ;;  %p239_p7 = scmp.eq.s32.totalorder %s76_s24, 0 }
  0x42   : > { %3057 = sst [smem:[#allocation30_spill]] %s2276_s21  ;;  %p79_p8 = scmp.eq.s32.totalorder %s78_s4, 0 }
  0x43   : > { %s241_s15 = sadd.s32 1, %s2019_s29  ;;  %s3060_s30 = sadd.s32 1, %s2031_s10 }
  0x44   : > { %s2286_s11 = scalar_select %p239_p7, %s2019_s29, %s241_s15  }
  0x45   : > { %s2291_s9 = scalar_select %p79_p8, %s2031_s10, %s3060_s30  }
  0x46   : > { %3059 = sst [smem:[#allocation31_spill]] %s2286_s11  ;;  %p251_p9 = scmp.ne.s32.totalorder %s2019_s29, %s2015_s28 }
  0x47   : > { %3061 = sst [smem:[#allocation32_spill]] %s2291_s9  ;;  %p252_p11 = scmp.eq.s32.totalorder %s2244_s14, 3 }
  0x48   : > { %p257_p12 = scmp.ne.s32.totalorder %s2015_s28, %s2011_s27  ;;  %p258_p6 = scmp.eq.s32.totalorder %s1405_s19, 3 }
  0x49   : > { %p2298_p10 = por %p252_p11, %p251_p9  ;;  %s304_s20 = sand.u32 1, %s2043_s13  }
  0x4a   : > { %p2303_p1 = por %p258_p6, %p257_p12  ;;  %s1408_s24 = sshll.u32 %s304_s20, 3 }
  0x4b   : > { %s3062_s5 = scalar_select %p2298_p10, 1, 0 }
  0x4c   : > { %s3063_s4 = scalar_select %p2303_p1, 1, 0 }
  0x4d   : > { %s1409_s15 = sshll.u32 %s2055_s16, 7  ;;  %s3065_s0 = sld [smem:[#allocation34_spill]] }
  0x4e   : > { %3064 = sst [smem:[#allocation33_spill]] %s3063_s4  ;;  %s308_s21 = scalar_lea.vmem [#allocation4], %s1408_s24 }
  0x4f   : > { %s315_s9 = sshll.u32 %s308_s21, 4  ;;  %p2315_p7 = pnand %p1545_p2, %p2263_p5  ;;  %s316_s9 = int_to_ptr.vmem [resolvable:$true] %s315_s9 }
  0x50   : > { %s357_s29 = scalar_lea.hbm %s3004_s2, %s2209_s26  ;;  %s305_s4 = scalar_lea.sflag [#allocation5], %s304_s20 }
  0x51   : > { %p1799_p6 = pneg %p2315_p7  ;;  %s1810_s16 = scalar_lea.vmem %s316_s9, 128 }
  0x52   : > { %p1811_p8 = scmp.ne.s32.totalorder %s316_s9, %s1810_s16  ;;  %s2069_s17 = smov [#allocation4]  }
  0x53   : > { %s313_s30 = scalar_lea.hbm %s3065_s0, %s1409_s15  ;;  %s1815_s25 = sshll.u32 %s2069_s17, 4  ;;  %s1816_s25 = int_to_ptr.vmem [resolvable:$false] %s1815_s25 }
  0x54   : > { %p1813_p9 = pnand %p1811_p8, %p1799_p6  ;;  %s1817_s21 = scalar_lea.vmem %s1816_s25, 256 }
  0x55   : > { %p1818_p2 = scmp.lt.s32.totalorder %s316_s9, %s1816_s25  ;;  %p1819_p5 = scmp.lt.s32.totalorder %s1817_s21, %s1810_s16 }
  0x56   : > { %p1814_p11 = pneg %p1813_p9 }
  0x57   : > { %p1820_p12 = por %p1819_p5, %p1818_p2 }
  0x59   : > { %p1821_p1 = pnand %p1820_p12, %p1814_p11 }
  0x5b   : > { %1824 = shalt.err (!%p1821_p1)
}
  0x5c   : > { %1528 = dma.hbm_to_vmem [thread:$0]  (!%p2315_p7), %s313_s30, 128, %s316_s9, %s305_s4  }
  0x5d   : > { %s349_s13 = scalar_lea.vmem [#allocation9], %s2205_s23  ;;  %p3067_p8 = pneg %p2218_p4 }
  0x5e   : > { %s358_s8 = sshll.u32 %s349_s13, 4  ;;  %s2070_s20 = smov [#allocation9]   ;;  %s359_s8 = int_to_ptr.vmem [resolvable:$true] %s358_s8 }
  0x5f   : > { %s1838_s11 = scalar_lea.vmem %s359_s8, 2048  ;;  %s1843_s24 = sshll.u32 %s2070_s20, 4  ;;  %s1844_s24 = int_to_ptr.vmem [resolvable:$false] %s1843_s24 }
  0x60   : > { %p1839_p6 = scmp.ne.s32.totalorder %s359_s8, %s1838_s11  ;;  %s1845_s16 = scalar_lea.vmem %s1844_s24, 4096 }
  0x61   : > { %p1846_p11 = scmp.lt.s32.totalorder %s359_s8, %s1844_s24  ;;  %p1847_p1 = scmp.lt.s32.totalorder %s1845_s16, %s1838_s11 }
  0x62   : > { %p1841_p9 = pnand %p1839_p6, %p3067_p8 }
  0x63   : > { %p1848_p2 = por %p1847_p1, %p1846_p11 }
  0x64   : > { %p1842_p10 = pneg %p1841_p9 }
  0x66   : > { %p1849_p5 = pnand %p1848_p2, %p1842_p10 }
  0x68   : > { %1852 = shalt.err (!%p1849_p5)
}
  0x69   : > { %s3068_s9 = smov 8   ;;  %s3069_s4 = smov 128  }
  0x6a   : > { %s3070_s15 = smov 256   ;;  %s380_s21 = scalar_lea.hbm %s3005_s3, %s2209_s26 }
  0x6b   : > { %1534 = dma.hbm_to_vmem [thread:$0]  (!%p2218_p4), %s357_s29, 2048, %s359_s8, %s2223_s22, %s3070_s15, %s3069_s4, %s3068_s9  }
  0x6c   : > { %s372_s13 = scalar_lea.vmem [#allocation10], %s2205_s23  ;;  %s3071_s20 = sand.u32 1, %s2031_s10  }
  0x6d   : > { %s381_s11 = sshll.u32 %s372_s13, 4  ;;  %s369_s24 = scalar_lea.sflag [#allocation11], %s3071_s20  ;;  %s382_s11 = int_to_ptr.vmem [resolvable:$true] %s381_s11 }
  0x6e   : > { %s1866_s16 = scalar_lea.vmem %s382_s11, 2048  ;;  %p3072_p7 = pmov %p3067_p8 }
  0x6f   : > { %p1867_p10 = scmp.ne.s32.totalorder %s382_s11, %s1866_s16  ;;  %s2071_s30 = smov [#allocation10]  }
  0x70   : > { %s1871_s19 = sshll.u32 %s2071_s30, 4  ;;  %s1872_s19 = int_to_ptr.vmem [resolvable:$false] %s1871_s19 }
  0x71   : > { %p1869_p12 = pnand %p1867_p10, %p3072_p7  ;;  %s1873_s0 = scalar_lea.vmem %s1872_s19, 4096 }
  0x72   : > { %p1874_p8 = scmp.lt.s32.totalorder %s382_s11, %s1872_s19  ;;  %p1875_p9 = scmp.lt.s32.totalorder %s1873_s0, %s1866_s16 }
  0x73   : > { %p1870_p6 = pneg %p1869_p12 }
  0x74   : > { %p1876_p11 = por %p1875_p9, %p1874_p8 }
  0x76   : > { %p1877_p1 = pnand %p1876_p11, %p1870_p6 }
  0x78   : > { %1880 = shalt.err (!%p1877_p1)
}
  0x79   : > { %1537 = dma.hbm_to_vmem [thread:$0]  (!%p2218_p4), %s380_s21, 2048, %s382_s11, %s369_s24, %s3070_s15, %s3069_s4, %s3068_s9  }
  0x7a   : > { %411 = sbr.rel (%p2239_p3) target bundleno = 964 (0x3c4), region = 48  ;;  %s413_s22 = sand.u32 (!%p2239_p3), 1, %s2039_s12  }
  0x7b   : > { %s2360_s23 = sshll.u32 (!%p2239_p3), %s413_s22, 3  ;;  %s414_s26 = scalar_lea.sflag (!%p2239_p3), [#allocation5], %s413_s22 }
  0x7c   : > { %s417_s0 = scalar_lea.vmem (!%p2239_p3), [#allocation4], %s2360_s23 }
  0x7f   : > { %1990 = dma.done.wait (%p2267_p13), %s414_s26, 128  }
  0x80   : > { %1992 = vsyncadd (%p2267_p13), %s414_s26, 4294967168  ;;  %s3074_s6 = sld [smem:[#allocation21_spill]]  ;;  %s422_s8 = sand.u32 1, %s2244_s14  }
  0x81   : > { %s423_s4 = scalar_lea.sflag [#allocation8], %s422_s8 }
  0x86   : > { %s424_s9 = sand.u32 1, %s3074_s6  }
  0x87   : > { %s1424_s7 = sshll.u32 %s424_s9, 7 }
  0x88   : > { %s2369_s15 = scalar_lea.vmem [#allocation7], %s1424_s7 }
  0x89   : > { %1994 = dma.done.wait (%p2280_p0), %s423_s4, 4096  }
  0x8a   : > { %1996 = vsyncadd (%p2280_p0), %s423_s4, 4294963200  ;;  %s2375_s17 = scalar_lea.vmem [#allocation9], %s1424_s7  ;;  %s441_s25 = scalar_lea.sflag [#allocation11], %s424_s9 }
  0x8b   : > { %s2377_s21 = scalar_lea.vmem [#allocation10], %s1424_s7 }
  0x8c   : > { %1998 = dma.done.wait (%p2280_p0), %s441_s25, 2048  }
  0x8d   : > { %2000 = vsyncadd (%p2280_p0), %s441_s25, 4294965248  ;;  %s3075_s14 = sld [smem:[#allocation24_spill]]  ;;  %s2384_s13 = sand.u32 1, %s2015_s28  }
  0x8e   : > { %s1427_s11 = sshll.u32 %s2384_s13, 3  ;;  %s3076_s16 = sld [smem:[#allocation36_spill]] }
  0x8f   : > { %s3077_s29 = sld [smem:[#allocation37_spill]]  ;;  %s2403_s7 = scalar_lea.vmem [#allocation12], %s1427_s11 }
  0x90   : > { %s3078_s8 = sld [smem:[#allocation38_spill]]  ;;  %s2405_s4 = scalar_lea.vmem [#allocation13], %s1427_s11 }
  0x91   : > { %s3079_s25 = sld [smem:[#allocation23_spill]] }
  0x93   : > { %p509_p4 = scmp.lt.s32.totalorder %s3075_s14, 1 }
  0x95   : > { %s3144_s14 = smov (!%p509_p4, %s3075_s14), 1 }
  0x96   : > { %s511_s30 = scalar_lea.vmem %s3076_s16, %s3144_s14  ;;  %s514_s22 = scalar_lea.vmem %s3077_s29, %s3144_s14 }
  0x97   : > { %s517_s9 = scalar_lea.vmem %s3078_s8, %s3144_s14  ;;  %p1429_p3 = scmp.ne.s32.totalorder %s3079_s25, 0 }
  0x99   : > { %521 = sbr.rel (%p1429_p3) target bundleno = 160 (0xa0), region = 68 }
  0x9e   : > { %vm523_vm0 = vcmask 0   ;;  %v2072_v0 = vmov 0.0  }
  0x9f   : > { %522 = vst [vmem:[#allocation2] sm:$0xff] %v2072_v0  ;;  %524 = vst.msk [vmem:[#allocation3] sm:$0x1] %vm523_vm0, %v2072_v0 }
  0xa0 PF: > { %v2409_v1 = vld [vmem:[%s2375_s17 + $0x78] sm:$0xff]  ;;  %v2073_v2 = vmov 0.0   ;;  %v2414_v4 = vld [vmem:[%s2375_s17 + $0x70] sm:$0xff]  ;;  %v2418_v6 = vld [vmem:[%s2375_s17 + $0x68] sm:$0xff]  ;;  %vm2074_vm13 = vmmov 0  }
  0xa1   : > { %1474 = vmatprep.subr.mxu0 %v2073_v2  ;;  %v588_v3 = vand.u32 2147483647, %v2409_v1  ;;  %v587_v5 = vand.u32 2147483647, %v2414_v4  ;;  %v586_v8 = vand.u32 2147483647, %v2418_v6  ;;  %1506 = vmatprep.mubr.msk.f32.mxu0 %vm2074_vm13, %v2073_v2 }
  0xa2   : > { %v2422_v9 = vld [vmem:[%s2375_s17 + $0x60] sm:$0xff]  ;;  %v2426_v14 = vld [vmem:[%s2375_s17 + $0x58] sm:$0xff]  ;;  %v2430_v19 = vld [vmem:[%s2375_s17 + $0x50] sm:$0xff]  ;;  %v572_v53 = vmax.f32 %v2409_v1, 0.0  ;;  %v571_v55 = vmax.f32 %v2414_v4, 0.0  ;;  %v570_v59 = vmax.f32 %v2418_v6, 0.0 }
  0xa3   : > { %v604_v7 = vsub.f32 0.0, %v588_v3  ;;  %v603_v10 = vsub.f32 0.0, %v587_v5  ;;  %v585_v11 = vand.u32 2147483647, %v2422_v9  ;;  %v602_v13 = vsub.f32 0.0, %v586_v8  ;;  %v2433_v22 = vld [vmem:[%s2375_s17 + $0x48] sm:$0xff] }
  0xa4   : > { %v584_v17 = vand.u32 2147483647, %v2426_v14  ;;  %v583_v23 = vand.u32 2147483647, %v2430_v19  ;;  %v582_v24 = vand.u32 2147483647, %v2433_v22 }
  0xa5   : > { %v635_v12 = vmul.f32 1.442695, %v604_v7  ;;  %v633_v15 = vmul.f32 1.442695, %v603_v10  ;;  %v601_v16 = vsub.f32 0.0, %v585_v11  ;;  %v2438_v26 = vld [vmem:[%s2375_s17 + $0x40] sm:$0xff] }
  0xa6   : > { %v631_v18 = vmul.f32 1.442695, %v602_v13  ;;  %v600_v21 = vsub.f32 0.0, %v584_v17  ;;  %v599_v27 = vsub.f32 0.0, %v583_v23  ;;  %v598_v28 = vsub.f32 0.0, %v582_v24  ;;  %v2442_v30 = vld [vmem:[%s2375_s17 + $0x38] sm:$0xff] }
  0xa7   : > { %1666 = vpow2.f32 %v635_v12  ;;  %v629_v20 = vmul.f32 1.442695, %v601_v16  ;;  %v581_v29 = vand.u32 2147483647, %v2438_v26  ;;  %v580_v31 = vand.u32 2147483647, %v2442_v30 }
  0xa8   : > { %1668 = vpow2.f32 %v633_v15  ;;  %v627_v25 = vmul.f32 1.442695, %v600_v21  ;;  %v2446_v32 = vld [vmem:[%s2375_s17 + $0x30] sm:$0xff]  ;;  %v625_v33 = vmul.f32 1.442695, %v599_v27  ;;  %v2450_v38 = vld [vmem:[%s2375_s17 + $0x28] sm:$0xff] }
  0xa9   : > { %1670 = vpow2.f32 %v631_v18  ;;  %v623_v34 = vmul.f32 1.442695, %v598_v28  ;;  %v597_v35 = vsub.f32 0.0, %v581_v29  ;;  %v596_v36 = vsub.f32 0.0, %v580_v31  ;;  %v2462_v50 = vld [vmem:[%s2375_s17 + $0x20] sm:$0xff]  ;;  %v2472_v56 = vld [vmem:[%s2369_s15 + $0x68] sm:$0xff] }
  0xaa   : > { %1672 = vpow2.f32 %v629_v20  ;;  %v579_v37 = vand.u32 2147483647, %v2446_v32  ;;  %v578_v43 = vand.u32 2147483647, %v2450_v38  ;;  %v577_v58 = vand.u32 2147483647, %v2462_v50 }
  0xab   : > { %1674 = vpow2.f32 %v627_v25  ;;  %v621_v39 = vmul.f32 1.442695, %v597_v35  ;;  %v619_v41 = vmul.f32 1.442695, %v596_v36  ;;  %v2479_v60 = vmul.f32 %v2472_v56, %v2472_v56  ;;  %v2485_v3 = vld [vmem:[%s2369_s15 + $0x60] sm:$0xff]  ;;  %v2488_v5 = vld [vmem:[%s2369_s15 + $0x58] sm:$0xff] }
  0xac   : > { %1676 = vpow2.f32 %v625_v33  ;;  %v595_v40 = vsub.f32 0.0, %v579_v37  ;;  %v594_v49 = vsub.f32 0.0, %v578_v43  ;;  %v569_v61 = vmax.f32 %v2422_v9, 0.0  ;;  %v2586_v4 = vld [vmem:[%s2369_s15 + $0x70] sm:$0xff] }
  0xad   : > { %1678 = vpow2.f32 %v623_v34  ;;  %v2496_v11 = vmul.f32 %v2485_v3, %v2485_v3  ;;  %v568_v12 = vmax.f32 %v2426_v14, 0.0  ;;  %v2501_v13 = vmul.f32 %v2488_v5, %v2488_v5 }
  0xae   : > { %v617_v42 = vmul.f32 1.442695, %v595_v40  ;;  %1680 = vpow2.f32 %v621_v39  ;;  %v615_v62 = vmul.f32 1.442695, %v594_v49  ;;  %v593_v18 = vsub.f32 0.0, %v577_v58  ;;  %v2568_v40 = vld [vmem:[%s2369_s15 + $0x78] sm:$0xff] }
  0xaf   : > { %1682 = vpow2.f32 %v619_v41  ;;  %v567_v31 = vmax.f32 %v2430_v19, 0.0  ;;  %v566_v37 = vmax.f32 %v2433_v22, 0.0 }
  0xb0   : > { %1684 = vpow2.f32 %v617_v42  ;;  %v613_v43 = vmul.f32 1.442695, %v593_v18  ;;  %v812_v18 = vld [vmem:[%s2377_s21 + $0x78] sm:$0xff] }
  0xb4   : > { %v2453_v44 = vpop.eup %1666 }
  0xb5   : > { %v2455_v45 = vpop.eup %1668  ;;  %v772_v46 = vadd.f32 1.0, %v2453_v44  ;;  %v775_v63 = vmul.f32 -0.5, %v2453_v44  ;;  %v778_v20 = vand.u32 2147483647, %v2453_v44 }
  0xb6   : > { %v2458_v47 = vpop.eup %1670  ;;  %v763_v48 = vadd.f32 1.0, %v2455_v45  ;;  %v766_v0 = vmul.f32 -0.5, %v2455_v45  ;;  %v769_v27 = vand.u32 2147483647, %v2455_v45 }
  0xb7   : > { %v2464_v51 = vpop.eup %1672  ;;  %1686 = vlog2.f32 %v772_v46  ;;  %v754_v52 = vadd.f32 1.0, %v2458_v47  ;;  %v757_v10 = vmul.f32 -0.5, %v2458_v47  ;;  %v776_v24 = vadd.f32 1.0, %v775_v63 }
  0xb8   : > { %1688 = vlog2.f32 %v763_v48  ;;  %v2468_v54 = vpop.eup %1674  ;;  %v745_v57 = vadd.f32 1.0, %v2464_v51  ;;  %v748_v16 = vmul.f32 -0.5, %v2464_v51  ;;  %v767_v25 = vadd.f32 1.0, %v766_v0 }
  0xb9   : > { %1690 = vlog2.f32 %v754_v52  ;;  %v736_v7 = vadd.f32 1.0, %v2468_v54  ;;  %v2491_v8 = vpop.eup %1676  ;;  %v739_v21 = vmul.f32 -0.5, %v2468_v54  ;;  %v758_v28 = vadd.f32 1.0, %v757_v10 }
  0xba   : > { %1692 = vlog2.f32 %v745_v57  ;;  %v2503_v15 = vpop.eup %1678  ;;  %v727_v17 = vadd.f32 1.0, %v2491_v8  ;;  %v760_v29 = vand.u32 2147483647, %v2458_v47  ;;  %v749_v34 = vadd.f32 1.0, %v748_v16 }
  0xbb   : > { %1694 = vlog2.f32 %v736_v7  ;;  %v718_v23 = vadd.f32 1.0, %v2503_v15  ;;  %v2513_v33 = vpop.eup %1680  ;;  %v751_v35 = vand.u32 2147483647, %v2464_v51  ;;  %v742_v36 = vand.u32 2147483647, %v2468_v54 }
  0xbc   : > { %1696 = vpow2.f32 %v615_v62  ;;  %v2518_v39 = vpop.eup %1682  ;;  %vm2520_vm1 = vcmp.lt.f32.partialorder %v778_v20, 0.0004427343  ;;  %v740_v41 = vadd.f32 1.0, %v739_v21  ;;  %v730_v42 = vmul.f32 -0.5, %v2491_v8 }
  0xbd   : > { %1698 = vlog2.f32 %v727_v17  ;;  %v2525_v46 = vpop.eup %1684  ;;  %v777_v48 = vmul.f32 %v2453_v44, %v776_v24  ;;  %v768_v49 = vmul.f32 %v2455_v45, %v767_v25  ;;  %vm2529_vm2 = vcmp.lt.f32.partialorder %v769_v27, 0.0004427343  ;;  %v809_v17 = vld [vmem:[%s2377_s21 + $0x60] sm:$0xff] }
  0xbe   : > { %1700 = vlog2.f32 %v718_v23  ;;  %v733_v57 = vand.u32 2147483647, %v2491_v8  ;;  %v759_v62 = vmul.f32 %v2458_v47, %v758_v28  ;;  %vm2535_vm3 = vcmp.lt.f32.partialorder %v760_v29, 0.0004427343 }
  0xbf   : > { %v721_v0 = vmul.f32 -0.5, %v2503_v15  ;;  %v709_v7 = vadd.f32 1.0, %v2513_v33  ;;  %v750_v45 = vmul.f32 %v2464_v51, %v749_v34  ;;  %vm2542_vm4 = vcmp.lt.f32.partialorder %v751_v35, 0.0004427343  ;;  %v811_v35 = vld [vmem:[%s2377_s21 + $0x70] sm:$0xff] }
  0xc0   : > { %vm2546_vm5 = vcmp.lt.f32.partialorder %v742_v36, 0.0004427343  ;;  %v741_v21 = vmul.f32 %v2468_v54, %v740_v41  ;;  %v731_v23 = vadd.f32 1.0, %v730_v42  ;;  %v700_v24 = vadd.f32 1.0, %v2518_v39 }
  0xc1   : > { %vm2555_vm6 = vcmp.lt.f32.partialorder %v733_v57, 0.0004427343  ;;  %v724_v28 = vand.u32 2147483647, %v2503_v15  ;;  %v722_v36 = vadd.f32 1.0, %v721_v0  ;;  %1702 = vlog2.f32 %v709_v7 }
  0xc2   : > { %v732_v57 = vmul.f32 %v2491_v8, %v731_v23  ;;  %1704 = vlog2.f32 %v700_v24 }
  0xc3   : > { %1706 = vpow2.f32 %v613_v43  ;;  %vm2599_vm7 = vcmp.lt.f32.partialorder %v724_v28, 0.0004427343  ;;  %v723_v16 = vmul.f32 %v2503_v15, %v722_v36  ;;  %v2618_v15 = vld [vmem:[%s2369_s15 + $0x50] sm:$0xff]  ;;  %v2634_v28 = vld [vmem:[%s2369_s15 + $0x48] sm:$0xff] }
  0xc4   : > { %v1687_v58 = vpop.eup %1686  ;;  %v994_v14 = vmul.f32 %v2618_v15, %v2618_v15 }
  0xc5   : > { %v1689_v44 = vpop.eup %1688  ;;  %v774_v10 = vmul.f32 0.6931472, %v1687_v58 }
  0xc6   : > { %v1691_v47 = vpop.eup %1690  ;;  %v765_v20 = vmul.f32 0.6931472, %v1689_v44 }
  0xc7   : > { %v780_v51 = vsel %vm2520_vm1, %v777_v48, %v774_v10  ;;  %v756_v25 = vmul.f32 0.6931472, %v1691_v47  ;;  %v1693_v29 = vpop.eup %1692 }
  0xc8   : > { %v2562_v34 = vadd.f32 %v780_v51, %v572_v53  ;;  %v771_v54 = vsel %vm2529_vm2, %v768_v49, %v765_v20  ;;  %v747_v1 = vmul.f32 0.6931472, %v1693_v29  ;;  %v691_v53 = vadd.f32 1.0, %v2525_v46  ;;  %v1695_v48 = vpop.eup %1694 }
  0xc9   : > { %v2572_v41 = vadd.f32 %v771_v54, %v571_v55  ;;  %v762_v42 = vsel %vm2535_vm3, %v759_v62, %v756_v25  ;;  %v2583_v58 = vpop.eup %1696  ;;  %v810_v62 = vld [vmem:[%s2377_s21 + $0x68] sm:$0xff]  ;;  %v738_v0 = vmul.f32 0.6931472, %v1695_v48  ;;  %v808_v54 = vld [vmem:[%s2377_s21 + $0x58] sm:$0xff]  ;;  %vm1090_vm2 = vcmask 0  }
  0xca   : > { %v828_v52 = vmul.f32 %v812_v18, %v2562_v34  ;;  %v2580_v49 = vadd.f32 %v762_v42, %v570_v59  ;;  %v753_v63 = vsel %vm2542_vm4, %v750_v45, %v747_v1  ;;  %v1699_v7 = vpop.eup %1698  ;;  %1708 = vlog2.f32 %v691_v53 }
  0xcb   : > { %v827_v55 = vmul.f32 %v811_v35, %v2572_v41  ;;  %v2597_v8 = vadd.f32 %v753_v63, %v569_v61  ;;  %v1701_v10 = vpop.eup %1700  ;;  %v744_v43 = vsel %vm2546_vm5, %v741_v21, %v738_v0  ;;  %v729_v45 = vmul.f32 0.6931472, %v1699_v7 }
  0xcc   : > { %v844_v6 = vadd.f32 %v828_v52, %v2568_v40  ;;  %v981_v59 = vmul.f32 %v2580_v49, %v2580_v49  ;;  %v826_v9 = vmul.f32 %v810_v62, %v2580_v49  ;;  %v792_v20 = vadd.f32 %v744_v43, %v568_v12 }
  0xcd   : > { %v843_v47 = vadd.f32 %v827_v55, %v2586_v4  ;;  %v980_v18 = vmul.f32 %v2597_v8, %v2597_v8  ;;  %v735_v21 = vsel %vm2555_vm6, %v732_v57, %v729_v45  ;;  %v720_v23 = vmul.f32 0.6931472, %v1701_v10 }
  0xce   : > { %1475 = vmatpush3.xpose.msra.mxu0 %v844_v6  ;;  %v2609_v61 = vadd.f32 %v2479_v60, %v981_v59  ;;  %v682_v24 = vadd.f32 1.0, %v2583_v58  ;;  %v2628_v51 = vadd.f32 %v735_v21, %v567_v31  ;;  %v712_v12 = vmul.f32 -0.5, %v2513_v33  ;;  %v1703_v53 = vpop.eup %1702  ;;  %v2753_v21 = vld [vmem:[%s2369_s15 + $0x38] sm:$0xff] }
  0xcf   : > { %1476 = vmatprep.subr.mxu0 %v2073_v2  ;;  %v2624_v60 = vadd.f32 %v2496_v11, %v980_v18  ;;  %v979_v25 = vmul.f32 %v792_v20, %v792_v20  ;;  %v726_v27 = vsel %vm2599_vm7, %v723_v16, %v720_v23  ;;  %v842_v29 = vadd.f32 %v826_v9, %v2472_v56  ;;  %v1705_v22 = vpop.eup %1704  ;;  %v806_v9 = vld [vmem:[%s2377_s21 + $0x48] sm:$0xff] }
  0xd0   : > { %v825_v11 = vmul.f32 %v809_v17, %v2597_v8  ;;  %v978_v19 = vmul.f32 %v2628_v51, %v2628_v51  ;;  %v993_v31 = vmul.f32 %v2634_v28, %v2634_v28  ;;  %v2651_v36 = vadd.f32 %v726_v27, %v566_v37  ;;  %v807_v37 = vld [vmem:[%s2377_s21 + $0x50] sm:$0xff]  ;;  %v2665_v0 = vpop.eup %1706 }
  0xd1   : > { %v2647_v35 = vadd.f32 %v2501_v13, %v979_v25  ;;  %v703_v56 = vmul.f32 -0.5, %v2518_v39  ;;  %1710 = vlog2.f32 %v682_v24  ;;  %v713_v1 = vadd.f32 1.0, %v712_v12  ;;  %v2700_v25 = vld [vmem:[%s2375_s17] sm:$0xff] }
  0xd2   : > { %1477 = vmatpush3.xpose.msra.mxu0 %v843_v47  ;;  %v2654_v42 = vadd.f32 %v994_v14, %v978_v19  ;;  %1712 = vlog2.f32 %v792_v20  ;;  %v977_v48 = vmul.f32 %v2651_v36, %v2651_v36  ;;  %v715_v52 = vand.u32 2147483647, %v2513_v33  ;;  %v2711_v19 = vld [vmem:[%s2375_s17 + $0x8] sm:$0xff] }
  0xd3   : > { %1478 = vmatprep.subr.mxu0 %v2073_v2  ;;  %v841_v13 = vadd.f32 %v825_v11, %v2485_v3  ;;  %v824_v57 = vmul.f32 %v808_v54, %v792_v20  ;;  %v704_v62 = vadd.f32 1.0, %v703_v56  ;;  %v694_v63 = vmul.f32 -0.5, %v2525_v46  ;;  %v805_v11 = vld [vmem:[%s2377_s21 + $0x40] sm:$0xff]  ;;  %v2723_v56 = vld [vmem:[%s2375_s17 + $0x18] sm:$0xff] }
  0xd4   : > { %v2662_v55 = vadd.f32 %v993_v31, %v977_v48  ;;  %v711_v7 = vmul.f32 0.6931472, %v1703_v53  ;;  %v714_v6 = vmul.f32 %v2513_v33, %v713_v1  ;;  %v706_v59 = vand.u32 2147483647, %v2518_v39 }
  0xd5   : > { %v685_v3 = vmul.f32 -0.5, %v2583_v58  ;;  %vm2670_vm8 = vcmp.lt.f32.partialorder %v715_v52, 0.0004427343  ;;  %v673_v10 = vadd.f32 1.0, %v2665_v0  ;;  %v840_v45 = vadd.f32 %v824_v57, %v2488_v5 }
  0xd6   : > { %1479 = vmatpush3.xpose.msra.mxu0 %v842_v29  ;;  %v823_v16 = vmul.f32 %v807_v37, %v2628_v51  ;;  %v565_v47 = vmax.f32 %v2438_v26, 0.0  ;;  %v697_v33 = vand.u32 2147483647, %v2525_v46  ;;  %v702_v18 = vmul.f32 0.6931472, %v1705_v22  ;;  %v804_v37 = vld [vmem:[%s2377_s21 + $0x38] sm:$0xff] }
  0xd7   : > { %1480 = vmatprep.subr.mxu0 %v2073_v2  ;;  %v1709_v43 = vpop.eup %1708  ;;  %v705_v17 = vmul.f32 %v2518_v39, %v704_v62  ;;  %v695_v20 = vadd.f32 1.0, %v694_v63  ;;  %1714 = vlog2.f32 %v673_v10  ;;  %v717_v5 = vsel %vm2670_vm8, %v714_v6, %v711_v7 }
  0xd8   : > { %vm2684_vm9 = vcmp.lt.f32.partialorder %v706_v59, 0.0004427343  ;;  %v686_v26 = vadd.f32 1.0, %v685_v3  ;;  %v688_v23 = vand.u32 2147483647, %v2583_v58  ;;  %v2691_v24 = vmul.f32 %v2568_v40, %v2568_v40 }
  0xd9   : > { %v2695_v39 = vmul.f32 %v2586_v4, %v2586_v4  ;;  %v564_v14 = vmax.f32 %v2442_v30, 0.0  ;;  %v563_v12 = vmax.f32 %v2446_v32, 0.0  ;;  %v839_v27 = vadd.f32 %v823_v16, %v2618_v15  ;;  %v2714_v30 = vld [vmem:[%s2375_s17 + $0x10] sm:$0xff] }
  0xda   : > { %1481 = vmatpush3.xpose.msra.mxu0 %v841_v13  ;;  %v822_v29 = vmul.f32 %v806_v9, %v2651_v36  ;;  %vm2705_vm10 = vcmp.lt.f32.partialorder %v697_v33, 0.0004427343  ;;  %v562_v4 = vmax.f32 %v2450_v38, 0.0  ;;  %v2717_v32 = vadd.f32 %v717_v5, %v565_v47  ;;  %v801_v38 = vld [vmem:[%s2377_s21 + $0x20] sm:$0xff] }
  0xdb   : > { %1482 = vmatprep.subr.mxu0 %v2073_v2  ;;  %v708_v15 = vsel %vm2684_vm9, %v705_v17, %v702_v18  ;;  %v693_v31 = vmul.f32 0.6931472, %v1709_v43  ;;  %v696_v54 = vmul.f32 %v2525_v46, %v695_v20  ;;  %v687_v53 = vmul.f32 %v2583_v58, %v686_v26  ;;  %v2745_v43 = vld [vmem:[%s2369_s15 + $0x40] sm:$0xff] }
  0xdc   : > { %vm2726_vm11 = vcmp.lt.f32.partialorder %v688_v23, 0.0004427343  ;;  %v676_v52 = vmul.f32 -0.5, %v2665_v0  ;;  %v573_v13 = vand.u32 2147483647, %v2700_v25  ;;  %v1027_v57 = vmul.f32 0.5, %v2647_v35 }
  0xdd   : > { %v821_v22 = vmul.f32 %v805_v11, %v2717_v32  ;;  %v574_v46 = vand.u32 2147483647, %v2711_v19  ;;  %v575_v62 = vand.u32 2147483647, %v2714_v30  ;;  %v838_v58 = vadd.f32 %v822_v29, %v2634_v28  ;;  %v803_v23 = vld [vmem:[%s2377_s21 + $0x30] sm:$0xff] }
  0xde   : > { %1483 = vmatpush3.xpose.msra.mxu0 %v840_v45  ;;  %v1711_v1 = vpop.eup %1710  ;;  %v2738_v7 = vadd.f32 %v708_v15, %v564_v14  ;;  %v576_v6 = vand.u32 2147483647, %v2723_v56  ;;  %v589_v59 = vsub.f32 0.0, %v573_v13  ;;  %v699_v35 = vsel %vm2705_vm10, %v696_v54, %v693_v31 }
  0xdf   : > { %1484 = vmatprep.subr.mxu0 %v2073_v2  ;;  %v1713_v63 = vpop.eup %1712  ;;  %v684_v3 = vmul.f32 0.6931472, %v1711_v1  ;;  %v590_v44 = vsub.f32 0.0, %v574_v46  ;;  %v591_v10 = vsub.f32 0.0, %v575_v62  ;;  %v677_v28 = vadd.f32 1.0, %v676_v52  ;;  %v2784_v52 = vld [vmem:[%s2369_s15 + $0x30] sm:$0xff] }
  0xe0   : > { %v820_v45 = vmul.f32 %v804_v37, %v2738_v7  ;;  %v592_v16 = vsub.f32 0.0, %v576_v6  ;;  %v605_v47 = vmul.f32 1.442695, %v589_v59  ;;  %v943_v18 = vmul.f32 0.6931472, %v1713_v63  ;;  %v2804_v6 = vld [vmem:[%s2369_s15 + $0x20] sm:$0xff] }
  0xe1   : > { %v607_v33 = vmul.f32 1.442695, %v590_v44  ;;  %v609_v9 = vmul.f32 1.442695, %v591_v10  ;;  %1716 = vlog2.f32 %v2597_v8  ;;  %v837_v17 = vadd.f32 %v821_v22, %v2745_v43 }
  0xe2   : > { %1485 = vmatpush3.xpose.msra.mxu0 %v839_v27  ;;  %v679_v20 = vand.u32 2147483647, %v2665_v0  ;;  %1718 = vpow2.f32 %v605_v47  ;;  %v611_v5 = vmul.f32 1.442695, %v592_v16  ;;  %v2755_v26 = vadd.f32 %v699_v35, %v563_v12 }
  0xe3   : > { %1486 = vmatprep.subr.mxu0 %v2073_v2  ;;  %v690_v14 = vsel %vm2726_vm11, %v687_v53, %v684_v3  ;;  %1720 = vpow2.f32 %v607_v33  ;;  %v982_v8 = vmul.f32 %v2572_v41, %v2572_v41  ;;  %v836_v29 = vadd.f32 %v820_v45, %v2753_v21  ;;  %v802_v53 = vld [vmem:[%s2377_s21 + $0x28] sm:$0xff] }
  0xe4   : > { %v1715_v27 = vpop.eup %1714  ;;  %v678_v11 = vmul.f32 %v2665_v0, %v677_v28  ;;  %1722 = vpow2.f32 %v609_v9  ;;  %v983_v40 = vmul.f32 %v2562_v34, %v2562_v34  ;;  %v963_v15 = vsub.f32 0.0, %v943_v18 }
  0xe5   : > { %v675_v12 = vmul.f32 0.6931472, %v1715_v27  ;;  %1724 = vpow2.f32 %v611_v5  ;;  %v1014_v31 = vadd.f32 %v2695_v39, %v982_v8  ;;  %v819_v54 = vmul.f32 %v803_v23, %v2755_v26 }
  0xe6   : > { %1487 = vmatpush3.xpose.msra.mxu0 %v838_v58  ;;  %vm2768_vm12 = vcmp.lt.f32.partialorder %v679_v20, 0.0004427343  ;;  %1726 = vlog2.f32 %v2580_v49  ;;  %v1015_v0 = vadd.f32 %v2691_v24, %v983_v40  ;;  %v2779_v39 = vadd.f32 %v690_v14, %v562_v4 }
  0xe7   : > { %1488 = vmatprep.subr.mxu0 %v2073_v2  ;;  %1728 = vlog2.f32 %v2572_v41  ;;  %v561_v48 = vmax.f32 %v2462_v50, 0.0  ;;  %v681_v49 = vsel %vm2768_vm12, %v678_v11, %v675_v12  ;;  %v2788_v24 = vadd.f32 %v1027_v57, %v963_v15  ;;  %v2798_v50 = vld [vmem:[%s2369_s15 + $0x28] sm:$0xff] }
  0xe8   : > { %1730 = vlog2.f32 %v2562_v34  ;;  %v835_v13 = vadd.f32 %v819_v54, %v2784_v52  ;;  %v818_v41 = vmul.f32 %v802_v53, %v2779_v39  ;;  %v1028_v28 = vmul.f32 0.5, %v2624_v60 }
  0xe9   : > { %v2794_v4 = vadd.f32 %v681_v49, %v561_v48  ;;  %v1029_v9 = vmul.f32 0.5, %v2609_v61  ;;  %v1030_v18 = vmul.f32 0.5, %v1014_v31  ;;  %v1031_v8 = vmul.f32 0.5, %v1015_v0 }
  0xea   : > { %1489 = vmatpush3.xpose.msra.mxu0 %v837_v17  ;;  %v834_v57 = vadd.f32 %v818_v41, %v2798_v50 }
  0xeb   : > { %1490 = vmatprep.subr.mxu0 %v2073_v2  ;;  %v817_v22 = vmul.f32 %v801_v38, %v2794_v4 }
  0xed   : > { %v833_v3 = vadd.f32 %v817_v22, %v2804_v6 }
  0xee   : > { %1491 = vmatpush3.xpose.msra.mxu0 %v836_v29  ;;  %v1717_v34 = vpop.eup %1716 }
  0xef   : > { %1492 = vmatprep.subr.mxu0 %v2073_v2  ;;  %v1719_v37 = vpop.eup %1718  ;;  %v945_v63 = vmul.f32 0.6931472, %v1717_v34  ;;  %v557_v34 = vmax.f32 %v2700_v25, 0.0  ;;  %v559_v25 = vmax.f32 %v2714_v30, 0.0 }
  0xf0   : > { %v1721_v46 = vpop.eup %1720  ;;  %v637_v62 = vadd.f32 1.0, %v1719_v37  ;;  %v640_v17 = vmul.f32 -0.5, %v1719_v37  ;;  %v643_v54 = vand.u32 2147483647, %v1719_v37 }
  0xf1   : > { %v1723_v58 = vpop.eup %1722  ;;  %v646_v59 = vadd.f32 1.0, %v1721_v46  ;;  %v964_v47 = vsub.f32 0.0, %v945_v63  ;;  %v649_v23 = vmul.f32 -0.5, %v1721_v46  ;;  %v652_v48 = vand.u32 2147483647, %v1721_v46 }
  0xf2   : > { %1493 = vmatpush3.xpose.msra.mxu0 %v835_v13  ;;  %v2806_v35 = vpop.eup %1724  ;;  %1732 = vlog2.f32 %v637_v62  ;;  %v655_v44 = vadd.f32 1.0, %v1723_v58  ;;  %v658_v27 = vmul.f32 -0.5, %v1723_v58  ;;  %v641_v12 = vadd.f32 1.0, %v640_v17 }
  0xf3   : > { %1494 = vmatprep.subr.mxu0 %v2073_v2  ;;  %v1727_v10 = vpop.eup %1726  ;;  %1734 = vlog2.f32 %v646_v59  ;;  %v664_v16 = vadd.f32 1.0, %v2806_v35  ;;  %v2814_v11 = vadd.f32 %v1028_v28, %v964_v47  ;;  %v667_v61 = vmul.f32 -0.5, %v2806_v35 }
  0xf4   : > { %v1729_v45 = vpop.eup %1728  ;;  %1736 = vlog2.f32 %v655_v44  ;;  %v947_v20 = vmul.f32 0.6931472, %v1727_v10  ;;  %v650_v1 = vadd.f32 1.0, %v649_v23  ;;  %v659_v49 = vadd.f32 1.0, %v658_v27  ;;  %v2848_v23 = vld [vmem:[%s2369_s15] sm:$0xff] }
  0xf5   : > { %v1731_v33 = vpop.eup %1730  ;;  %1738 = vlog2.f32 %v664_v16  ;;  %v949_v5 = vmul.f32 0.6931472, %v1729_v45  ;;  %v661_v0 = vand.u32 2147483647, %v1723_v58  ;;  %v642_v13 = vmul.f32 %v1719_v37, %v641_v12  ;;  %v528_v12 = vld [vmem:[%s2369_s15 + $0x18] sm:$0xff] }
  0xf6   : > { %1495 = vmatpush3.xpose.msra.mxu0 %v834_v57  ;;  %v951_v14 = vmul.f32 0.6931472, %v1731_v33  ;;  %v965_v60 = vsub.f32 0.0, %v947_v20  ;;  %v668_v41 = vadd.f32 1.0, %v667_v61  ;;  %vm2824_vm14 = vcmp.lt.f32.partialorder %v643_v54, 0.0004427343 }
  0xf7   : > { %1496 = vmatprep.subr.mxu0 %v2073_v2  ;;  %v966_v29 = vsub.f32 0.0, %v949_v5  ;;  %v651_v22 = vmul.f32 %v1721_v46, %v650_v1  ;;  %v670_v62 = vand.u32 2147483647, %v2806_v35  ;;  %v558_v59 = vmax.f32 %v2711_v19, 0.0  ;;  %v798_v61 = vld [vmem:[%s2377_s21 + $0x8] sm:$0xff] }
  0xf8   : > { %v967_v40 = vsub.f32 0.0, %v951_v14  ;;  %v2817_v15 = vadd.f32 %v1029_v9, %v965_v60  ;;  %vm2830_vm15 = vcmp.lt.f32.partialorder %v652_v48, 0.0004427343  ;;  %v660_v37 = vmul.f32 %v1723_v58, %v659_v49  ;;  %v526_v14 = vld [vmem:[%s2369_s15 + $0x8] sm:$0xff] }
  0xf9   : > { %v2819_v31 = vadd.f32 %v1030_v18, %v966_v29  ;;  %1740 = vlog2.f32 %v2755_v26  ;;  %vm662_vm0 = vcmp.lt.f32.partialorder %v661_v0, 0.0004427343  ;;  %v669_v28 = vmul.f32 %v2806_v35, %v668_v41  ;;  %v800_v35 = vld [vmem:[%s2377_s21 + $0x18] sm:$0xff] }
  0xfa   : > { %1497 = vmatpush3.xpose.msra.mxu0 %v833_v3  ;;  %v2821_v53 = vadd.f32 %v1031_v8, %v967_v40  ;;  %1742 = vlog2.f32 %v2794_v4  ;;  %v560_v58 = vmax.f32 %v2723_v56, 0.0  ;;  %vm671_vm1 = vcmp.lt.f32.partialorder %v670_v62, 0.0004427343  ;;  %v799_v56 = vld [vmem:[%s2377_s21 + $0x10] sm:$0xff] }
  0xfb   : > { %1498 = vmatprep.subr.mxu0 %v2073_v2  ;;  %1744 = vlog2.f32 %v2779_v39  ;;  %v527_v8 = vld [vmem:[%s2369_s15 + $0x10] sm:$0xff]  ;;  %v992_v29 = vmul.f32 %v2745_v43, %v2745_v43  ;;  %v991_v40 = vmul.f32 %v2753_v21, %v2753_v21  ;;  %v990_v54 = vmul.f32 %v2784_v52, %v2784_v52 }
  0xfc   : > { %v984_v49 = vmul.f32 %v2848_v23, %v2848_v23  ;;  %v986_v41 = vmul.f32 %v527_v8, %v527_v8  ;;  %v976_v52 = vmul.f32 %v2717_v32, %v2717_v32  ;;  %v975_v57 = vmul.f32 %v2738_v7, %v2738_v7 }
  0xff   : > { %v1733_v38 = vpop.eup %1732 }
 0x100   : > { %v1735_v63 = vpop.eup %1734  ;;  %v639_v3 = vmul.f32 0.6931472, %v1733_v38 }
 0x101   : > { %v1737_v10 = vpop.eup %1736  ;;  %v648_v45 = vmul.f32 0.6931472, %v1735_v63  ;;  %v974_v63 = vmul.f32 %v2755_v26, %v2755_v26 }
 0x102   : > { %v645_v46 = vsel %vm2824_vm14, %v642_v13, %v639_v3  ;;  %v657_v19 = vmul.f32 0.6931472, %v1737_v10  ;;  %v1739_v16 = vpop.eup %1738  ;;  %v985_v13 = vmul.f32 %v526_v14, %v526_v14  ;;  %v987_v3 = vmul.f32 %v528_v12, %v528_v12 }
 0x103   : > { %v654_v47 = vsel %vm2830_vm15, %v651_v22, %v648_v45  ;;  %v781_v30 = vadd.f32 %v645_v46, %v557_v34  ;;  %v666_v9 = vmul.f32 0.6931472, %v1739_v16  ;;  %v972_v22 = vmul.f32 %v2794_v4, %v2794_v4 }
 0x104   : > { %v663_v33 = vsel %vm662_vm0, %v660_v37, %v657_v19  ;;  %v782_v18 = vadd.f32 %v654_v47, %v558_v59  ;;  %v1008_v46 = vadd.f32 %v992_v29, %v976_v52  ;;  %v1007_v19 = vadd.f32 %v991_v40, %v975_v57  ;;  %v846_v52 = vld [vmem:[%s417_s0] sm:$0xff]  ;;  %s3108_s0 = sld [smem:[#allocation23_spill]] }
 0x105   : > { %v783_v17 = vadd.f32 %v663_v33, %v559_v25  ;;  %1746 = vlog2.f32 %v781_v30  ;;  %v672_v20 = vsel %vm671_vm1, %v669_v28, %v666_v9  ;;  %v968_v48 = vmul.f32 %v781_v30, %v781_v30 }
 0x106   : > { %1748 = vlog2.f32 %v782_v18  ;;  %v784_v5 = vadd.f32 %v672_v20, %v560_v58  ;;  %v969_v0 = vmul.f32 %v782_v18, %v782_v18  ;;  %v814_v38 = vmul.f32 %v798_v61, %v782_v18  ;;  %v1741_v34 = vpop.eup %1740 }
 0x107   : > { %1750 = vlog2.f32 %v783_v17  ;;  %v815_v60 = vmul.f32 %v799_v56, %v783_v17  ;;  %v970_v43 = vmul.f32 %v783_v17, %v783_v17  ;;  %v1743_v62 = vpop.eup %1742  ;;  %v1000_v44 = vadd.f32 %v984_v49, %v968_v48 }
 0x108   : > { %1752 = vlog2.f32 %v2738_v7  ;;  %v816_v27 = vmul.f32 %v800_v35, %v784_v5  ;;  %v971_v59 = vmul.f32 %v784_v5, %v784_v5  ;;  %v989_v7 = vmul.f32 %v2798_v50, %v2798_v50  ;;  %v1745_v37 = vpop.eup %1744 }
 0x109   : > { %1754 = vlog2.f32 %v784_v5  ;;  %v831_v21 = vadd.f32 %v815_v60, %v527_v8  ;;  %v1001_v4 = vadd.f32 %v985_v13, %v969_v0  ;;  %v1002_v10 = vadd.f32 %v986_v41, %v970_v43 }
 0x10a   : > { %1756 = vlog2.f32 %v2717_v32  ;;  %v832_v1 = vadd.f32 %v816_v27, %v528_v12  ;;  %v973_v32 = vmul.f32 %v2779_v39, %v2779_v39  ;;  %v929_v28 = vmul.f32 0.6931472, %v1743_v62  ;;  %p1446_p13 = scmp.ne.s32.totalorder %s3108_s0, 1 }
 0x10b   : > { %1758 = vlog2.f32 %v2651_v36  ;;  %v988_v36 = vmul.f32 %v2804_v6, %v2804_v6  ;;  %v830_v6 = vadd.f32 %v814_v38, %v526_v14  ;;  %v1006_v58 = vadd.f32 %v990_v54, %v974_v63 }
 0x10c   : > { %1760 = vlog2.f32 %v2628_v51  ;;  %1499 = vmatpush3.xpose.msra.mxu0 %v832_v1  ;;  %v797_v51 = vld [vmem:[%s2377_s21] sm:$0xff]  ;;  %v1003_v39 = vadd.f32 %v987_v3, %v971_v59  ;;  %v1016_v33 = vmul.f32 0.5, %v1000_v44  ;;  %v931_v50 = vmul.f32 0.6931472, %v1745_v37 }
 0x10d   : > { %1500 = vmatprep.subr.mxu0 %v2073_v2  ;;  %v813_v25 = vmul.f32 %v797_v51, %v781_v30  ;;  %v1004_v26 = vadd.f32 %v988_v36, %v972_v22  ;;  %v1005_v18 = vadd.f32 %v989_v7, %v973_v32  ;;  %v1017_v20 = vmul.f32 0.5, %v1001_v4 }
 0x10e   : > { %v1018_v5 = vmul.f32 0.5, %v1002_v10  ;;  %v933_v27 = vmul.f32 0.6931472, %v1741_v34  ;;  %v956_v60 = vsub.f32 0.0, %v929_v28  ;;  %v1019_v1 = vmul.f32 0.5, %v1003_v39 }
 0x10f   : > { %v829_v14 = vadd.f32 %v813_v25, %v2848_v23  ;;  %v1020_v29 = vmul.f32 0.5, %v1004_v26  ;;  %v957_v0 = vsub.f32 0.0, %v931_v50  ;;  %v1021_v13 = vmul.f32 0.5, %v1005_v18 }
 0x110   : > { %1501 = vmatpush3.xpose.msra.mxu0 %v831_v21  ;;  %v1022_v21 = vmul.f32 0.5, %v1006_v58  ;;  %v958_v22 = vsub.f32 0.0, %v933_v27  ;;  %v1023_v62 = vmul.f32 0.5, %v1007_v19  ;;  %v1024_v37 = vmul.f32 0.5, %v1008_v46 }
 0x111   : > { %1502 = vmatprep.subr.mxu0 %v2073_v2  ;;  %v1036_v36 = vadd.f32 %v1020_v29, %v956_v60  ;;  %v1037_v32 = vadd.f32 %v1021_v13, %v957_v0  ;;  %v1025_v26 = vmul.f32 0.5, %v2662_v55  ;;  %v1026_v39 = vmul.f32 0.5, %v2654_v42 }
 0x112   : > { %v1747_v45 = vpop.eup %1746  ;;  %v1038_v25 = vadd.f32 %v1022_v21, %v958_v22  ;;  %v1441_v27 = vadd.f32 -0.5, %v2788_v24  ;;  %v1442_v29 = vadd.f32 -0.5, %v2814_v11 }
 0x113   : > { %v1749_v16 = vpop.eup %1748  ;;  %v921_v47 = vmul.f32 0.6931472, %v1747_v45  ;;  %v1434_v45 = vadd.f32 -0.5, %v1036_v36 }
 0x114   : > { %v1751_v9 = vpop.eup %1750  ;;  %v923_v17 = vmul.f32 0.6931472, %v1749_v16  ;;  %1503 = vmatpush3.xpose.msra.mxu0 %v830_v6  ;;  %v1436_v50 = vadd.f32 -0.5, %v1038_v25 }
 0x115   : > { %v1753_v35 = vpop.eup %1752  ;;  %v925_v56 = vmul.f32 0.6931472, %v1751_v9  ;;  %v952_v30 = vsub.f32 0.0, %v921_v47  ;;  %1504 = vmatprep.subr.mxu0 %v2073_v2  ;;  %v1435_v47 = vadd.f32 -0.5, %v1037_v32 }
 0x116   : > { %v1755_v8 = vpop.eup %1754  ;;  %v953_v40 = vsub.f32 0.0, %v923_v17  ;;  %v935_v49 = vmul.f32 0.6931472, %v1753_v35 }
 0x117   : > { %v1757_v12 = vpop.eup %1756  ;;  %v927_v61 = vmul.f32 0.6931472, %v1755_v8  ;;  %v954_v54 = vsub.f32 0.0, %v925_v56  ;;  %v1032_v48 = vadd.f32 %v1016_v33, %v952_v30 }
 0x118   : > { %v1033_v41 = vadd.f32 %v1017_v20, %v953_v40  ;;  %v1759_v43 = vpop.eup %1758  ;;  %1505 = vmatpush3.xpose.msra.mxu0 %v829_v14  ;;  %v937_v2 = vmul.f32 0.6931472, %v1757_v12  ;;  %v959_v44 = vsub.f32 0.0, %v935_v49  ;;  %v1443_v40 = vadd.f32 -0.5, %v2817_v15 }
 0x119   : > { %v955_v23 = vsub.f32 0.0, %v927_v61  ;;  %v1034_v38 = vadd.f32 %v1018_v5, %v954_v54  ;;  %v1430_v34 = vadd.f32 -0.5, %v1032_v48  ;;  %v1761_v57 = vpop.eup %1760  ;;  %v939_v3 = vmul.f32 0.6931472, %v1759_v43 }
 0x11a   : > { %v1431_v51 = vadd.f32 -0.5, %v1033_v41  ;;  %v941_v4 = vmul.f32 0.6931472, %v1761_v57  ;;  %v960_v6 = vsub.f32 0.0, %v937_v2  ;;  %v1039_v58 = vadd.f32 %v1023_v62, %v959_v44 }
 0x11b   : > { %v1035_v63 = vadd.f32 %v1019_v1, %v955_v23  ;;  %v1432_v59 = vadd.f32 -0.5, %v1034_v38  ;;  %1507 = vmatmul.mubr.f32.vlgmr.msra.gmra.mxu0 %v846_v52  ;;  %v961_v16 = vsub.f32 0.0, %v939_v3  ;;  %v1444_v61 = vadd.f32 -0.5, %v2819_v31  ;;  %v845_v38 = vld [vmem:[#allocation2] sm:$0xff]  ;;  %v919_v31 = vld [vmem:[#allocation3] sm:$0x1] }
 0x11c   : > { %v1064_v7 = vadd.f32 %v1431_v51, %v1430_v34  ;;  %v962_v33 = vsub.f32 0.0, %v941_v4  ;;  %v1040_v9 = vadd.f32 %v1024_v37, %v960_v6  ;;  %v1437_v20 = vadd.f32 -0.5, %v1039_v58 }
 0x11d   : > { %v1433_v10 = vadd.f32 -0.5, %v1035_v63  ;;  %v1041_v17 = vadd.f32 %v1025_v26, %v961_v16  ;;  %v1445_v1 = vadd.f32 -0.5, %v2821_v53 }
 0x11e   : > { %v1065_v28 = vadd.f32 %v1432_v59, %v1064_v7  ;;  %v1042_v35 = vadd.f32 %v1026_v39, %v962_v33  ;;  %v1438_v56 = vadd.f32 -0.5, %v1040_v9 }
 0x11f   : > { %v1439_v5 = vadd.f32 -0.5, %v1041_v17 }
 0x120   : > { %v1066_v19 = vadd.f32 %v1433_v10, %v1065_v28  ;;  %v1440_v8 = vadd.f32 -0.5, %v1042_v35 }
 0x122   : > { %v1067_v18 = vadd.f32 %v1434_v45, %v1066_v19 }
 0x124   : > { %v1068_v46 = vadd.f32 %v1435_v47, %v1067_v18 }
 0x126   : > { %v1069_v30 = vadd.f32 %v1436_v50, %v1068_v46 }
 0x128   : > { %v1070_v14 = vadd.f32 %v1437_v20, %v1069_v30 }
 0x12a   : > { %v1071_v55 = vadd.f32 %v1438_v56, %v1070_v14 }
 0x12c   : > { %v1072_v60 = vadd.f32 %v1439_v5, %v1071_v55 }
 0x12e   : > { %v1073_v42 = vadd.f32 %v1440_v8, %v1072_v60 }
 0x130   : > { %v1074_v12 = vadd.f32 %v1441_v27, %v1073_v42 }
 0x132   : > { %v1075_v54 = vadd.f32 %v1442_v29, %v1074_v12 }
 0x134   : > { %v1076_v48 = vadd.f32 %v1443_v40, %v1075_v54 }
 0x136   : > { %v1077_v49 = vadd.f32 %v1444_v61, %v1076_v48 }
 0x138   : > { %v1078_v0 = vadd.f32 %v1445_v1, %v1077_v49 }
 0x13a   : > { %1079 = vadd.xlane.f32.xlu0 %v1078_v0 }
 0x1c3   : > { %v1080_v13 = vpop.xlane.xlu0 %1079 }
 0x1c4   : > { %v1081_v41 = vrot.slane %v1080_v13, 4 }
 0x1c6   : > { %v1082_v43 = vadd.f32 %v1081_v41, %v1080_v13 }
 0x1c8   : > { %v1083_v24 = vrot.slane %v1082_v43, 2 }
 0x1ca   : > { %v1084_v21 = vadd.f32 %v1083_v24, %v1082_v43 }
 0x1cc   : > { %v1085_v23 = vrot.slane %v1084_v21, 1 }
 0x1ce   : > { %v1086_v11 = vadd.f32 %v1085_v23, %v1084_v21 }
 0x1d0   : > { %1509 = vpush %v1086_v11 }
 0x1db   : > { %v913_v15 = vpop.f32.mrf.mxu0 }
 0x1dc   : > { %v917_v34 = vadd.f32 %v913_v15, %v845_v38 }
 0x1dd   : > { %v1508_v52 = vpop.f32.mrf.mxu0 }
 0x1de   : > { %918 = vst [vmem:[#allocation2] sm:$0xff] %v917_v34 }
 0x201   : > { %s1510_s23 = spop %1509  ;;  %1095 = sbr.rel (%p1446_p13) target bundleno = 915 (0x393), region = 72 }
 0x202   : > { %v1088_v53 = vstv %s1510_s23 }
 0x203   : > { %v1089_v57 = vadd.f32 %v1088_v53, %v919_v31 }
 0x205   : > { %1091 = vst.msk [vmem:[#allocation3] sm:$0x1] %vm1090_vm2, %v1089_v57 }
 0x206   : > { %v1097_v2 = vld [vmem:[%s514_s22] sm:$0x1]  ;;  %vm1134_vm4 = vcmask 1040384   ;;  %v1118_v20 = vlaneseq  ;;  %v2075_v35 = vmov 0  }
 0x207   : > { %v1099_v22 = vand.u32 2147483647, %v1097_v2  ;;  %v1098_v4 = vmax.f32 %v1097_v2, 0.0  ;;  %v1113_v6 = vld [vmem:[%s517_s9] sm:$0x1]  ;;  %1762 = vset.pattern.permute.xlu0 %v2075_v35 }
 0x208   : > { %v1096_v28 = vld [vmem:[%s511_s30] sm:$0x1]  ;;  %v1119_v46 = vshrl.u32 %v1118_v20, 7 }
 0x209   : > { %v1100_v36 = vsub.f32 0.0, %v1099_v22  ;;  %v1129_v58 = vmul.f32 %v1096_v28, %v1096_v28  ;;  %v1116_v30 = vld [vmem:[#allocation2] sm:$0xff] }
 0x20a   : > { %v1120_v56 = vsub.s32 0, %v1119_v46 }
 0x20b   : > { %v1101_v51 = vmul.f32 1.442695, %v1100_v36 }
 0x20c   : > { %v1146_v12 = vld [vmem:[#allocation3] sm:$0x1] }
 0x20d   : > { %1763 = vpow2.f32 %v1101_v51  ;;  %v1147_v61 = vmul.f32 1.5258789e-05, %v1146_v12 }
 0x21a   : > { %v1764_v62 = vpop.eup %1763 }
 0x21b   : > { %v1103_v63 = vadd.f32 1.0, %v1764_v62  ;;  %v1106_v59 = vmul.f32 -0.5, %v1764_v62  ;;  %v1109_v44 = vand.u32 2147483647, %v1764_v62 }
 0x21d   : > { %1765 = vlog2.f32 %v1103_v63  ;;  %v1107_v3 = vadd.f32 1.0, %v1106_v59  ;;  %vm1110_vm3 = vcmp.lt.f32.partialorder %v1109_v44, 0.0004427343 }
 0x21f   : > { %v1108_v32 = vmul.f32 %v1764_v62, %v1107_v3 }
 0x22a   : > { %v1766_v7 = vpop.eup %1765 }
 0x22b   : > { %v1105_v37 = vmul.f32 0.6931472, %v1766_v7 }
 0x22d   : > { %v1111_v10 = vsel %vm1110_vm3, %v1108_v32, %v1105_v37 }
 0x22e   : > { %v1112_v25 = vadd.f32 %v1111_v10, %v1098_v4 }
 0x230   : > { %v1114_v45 = vmul.f32 %v1113_v6, %v1112_v25  ;;  %1767 = vlog2.f32 %v1112_v25  ;;  %v1128_v16 = vmul.f32 %v1112_v25, %v1112_v25 }
 0x232   : > { %v1115_v26 = vadd.f32 %v1114_v45, %v1096_v28  ;;  %v1130_v47 = vadd.f32 %v1129_v58, %v1128_v16 }
 0x234   : > { %v1131_v33 = vmul.f32 0.5, %v1130_v47  ;;  %v1121_v5 = vrot.slane %v1115_v26, %v1120_v56 }
 0x236   : > { %v1123_v14 = vadd.f32 %v1121_v5, %v1116_v30 }
 0x238   : > { %1124 = vst [vmem:[%s2403_s7] sm:$0xff] %v1123_v14 }
 0x23d   : > { %v1768_v19 = vpop.eup %1767 }
 0x23e   : > { %v1126_v39 = vmul.f32 0.6931472, %v1768_v19 }
 0x240   : > { %v1127_v9 = vsub.f32 0.0, %v1126_v39 }
 0x242   : > { %v1132_v50 = vadd.f32 %v1131_v33, %v1127_v9 }
 0x244   : > { %v1447_v18 = vadd.f32 -0.5, %v1132_v50 }
 0x246   : > { %v1135_v17 = vsel %vm1134_vm4, %v1447_v18, 0.0 }
 0x247   : > { %1136 = vadd.xlane.f32.xlu0 %v1135_v17 }
 0x2d0   : > { %v1137_v8 = vpop.xlane.xlu0 %1136 }
 0x2d1   : > { %v1138_v55 = vrot.slane %v1137_v8, 4 }
 0x2d3   : > { %v1139_v27 = vadd.f32 %v1138_v55, %v1137_v8 }
 0x2d5   : > { %v1140_v60 = vrot.slane %v1139_v27, 2 }
 0x2d7   : > { %v1141_v29 = vadd.f32 %v1140_v60, %v1139_v27 }
 0x2d9   : > { %v1142_v42 = vrot.slane %v1141_v29, 1 }
 0x2db   : > { %v1143_v40 = vadd.f32 %v1142_v42, %v1141_v29 }
 0x2dd   : > { %1511 = vpush %v1143_v40 }
 0x30e   : > { %s1512_s14 = spop %1511 }
 0x30f   : > { %v1145_v54 = vstv %s1512_s14 }
 0x310   : > { %v1148_v1 = vmul.f32 0.00390625, %v1145_v54 }
 0x312   : > { %v1149_v48 = vadd.f32 %v1148_v1, %v1147_v61 }
 0x314   : > { %v1154_v49 = vrot.slane %v1149_v48, %v1120_v56 }
 0x316   : > { %1156 = vperm.xlu0 %1762, %v1154_v49  }
 0x391   : > { %v1157_v0 = vpop.permute.xlu0 %1156 }
 0x392   : > { %1159 = vst [vmem:[%s2405_s4] sm:$0xff] %v1157_v0 }
 0x393 PF: > { %s3112_s30 = sld [smem:[#allocation24_spill]]  ;;  %s1179_s9 = sshll.u32 %s2403_s7, 4  ;;  %s1180_s9 = int_to_ptr.vmem [resolvable:$true] %s1179_s9 }
 0x394   : > { %s3113_s6 = sld [smem:[#allocation39_spill]]  ;;  %s1161_s25 = scalar_lea.sflag [#allocation6], %s2384_s13 }
 0x395   : > { %s1881_s23 = scalar_lea.vmem %s1180_s9, 128  ;;  %p3114_p2 = scmp.ne.s32.totalorder %s3062_s5, 0 }
 0x396   : > { %p1882_p0 = scmp.ne.s32.totalorder %s1180_s9, %s1881_s23  ;;  %s2076_s0 = smov [#allocation12]  }
 0x397   : > { %s1885_s15 = sshll.u32 %s2076_s0, 4  ;;  %s1886_s15 = int_to_ptr.vmem [resolvable:$false] %s1885_s15 }
 0x398   : > { %p1883_p5 = pnand %p1882_p0, %p3114_p2  ;;  %s1887_s17 = scalar_lea.vmem %s1886_s15, 256 }
 0x399   : > { %s1450_s29 = sshll.u32 %s3112_s30, 7  ;;  %p1888_p7 = scmp.lt.s32.totalorder %s1180_s9, %s1886_s15 }
 0x39a   : > { %s1177_s8 = scalar_lea.hbm %s3113_s6, %s1450_s29  ;;  %p1884_p10 = pneg %p1883_p5 }
 0x39b   : > { %p1889_p12 = scmp.lt.s32.totalorder %s1887_s17, %s1881_s23 }
 0x39d   : > { %p1890_p6 = por %p1889_p12, %p1888_p7 }
 0x39f   : > { %p1891_p8 = pnand %p1890_p6, %p1884_p10 }
 0x3a1   : > { %1894 = shalt.err (!%p1891_p8)
}
 0x3a2   : > { %s1895_s21 = scalar_lea.hbm %s1177_s8, 128  ;;  %s1899_s20 = scalar_lea.hbm %s3113_s6, 256 }
 0x3a3   : > { %p1896_p9 = scmp.ne.s32.totalorder %s1177_s8, %s1895_s21  ;;  %p1900_p4 = scmp.lt.s32.totalorder %s1177_s8, %s3113_s6 }
 0x3a4   : > { %p1901_p3 = scmp.lt.s32.totalorder %s1899_s20, %s1895_s21 }
 0x3a5   : > { %p1897_p11 = pnand %p1896_p9, %p3114_p2 }
 0x3a6   : > { %p1902_p13 = por %p1901_p3, %p1900_p4 }
 0x3a7   : > { %p1898_p1 = pneg %p1897_p11 }
 0x3a9   : > { %p1903_p0 = pnand %p1902_p13, %p1898_p1 }
 0x3ab   : > { %1906 = shalt.err (!%p1903_p0)
}
 0x3ac   : > { %1521 = dma.vmem_to_hbm [thread:$0]  (%p3114_p2), %s1180_s9, 128, %s1177_s8, %s1161_s25  }
 0x3ad   : > { %s3115_s14 = sld [smem:[#allocation40_spill]]  ;;  %s1192_s23 = sshll.u32 %s2405_s4, 4  ;;  %s1193_s23 = int_to_ptr.vmem [resolvable:$true] %s1192_s23 }
 0x3ae   : > { %s1166_s0 = scalar_lea.sflag [#allocation14], %s2384_s13  ;;  %s1907_s15 = scalar_lea.vmem %s1193_s23, 128 }
 0x3af   : > { %p1908_p5 = scmp.ne.s32.totalorder %s1193_s23, %s1907_s15  ;;  %s2077_s17 = smov [#allocation13]  }
 0x3b0   : > { %s1911_s21 = sshll.u32 %s2077_s17, 4  ;;  %s1912_s21 = int_to_ptr.vmem [resolvable:$false] %s1911_s21 }
 0x3b1   : > { %p1909_p10 = pnand %p1908_p5, %p3114_p2  ;;  %s1913_s7 = scalar_lea.vmem %s1912_s21, 256 }
 0x3b2   : > { %p1914_p12 = scmp.lt.s32.totalorder %s1193_s23, %s1912_s21  ;;  %p1915_p6 = scmp.lt.s32.totalorder %s1913_s7, %s1907_s15 }
 0x3b3   : > { %s3116_s22 = smov %s3115_s14  ;;  %s1190_s26 = scalar_lea.hbm %s3115_s14, %s1450_s29 }
 0x3b4   : > { %p1910_p7 = pneg %p1909_p10  ;;  %p1916_p8 = por %p1915_p6, %p1914_p12 }
 0x3b6   : > { %p1917_p9 = pnand %p1916_p8, %p1910_p7 }
 0x3b8   : > { %1920 = shalt.err (!%p1917_p9)
}
 0x3b9   : > { %s1921_s30 = scalar_lea.hbm %s1190_s26, 128  ;;  %s1925_s29 = scalar_lea.hbm %s3116_s22, 256 }
 0x3ba   : > { %p1922_p11 = scmp.ne.s32.totalorder %s1190_s26, %s1921_s30  ;;  %p1926_p3 = scmp.lt.s32.totalorder %s1190_s26, %s3116_s22 }
 0x3bb   : > { %p1927_p13 = scmp.lt.s32.totalorder %s1925_s29, %s1921_s30 }
 0x3bc   : > { %p1923_p1 = pnand %p1922_p11, %p3114_p2 }
 0x3bd   : > { %p1928_p0 = por %p1927_p13, %p1926_p3 }
 0x3be   : > { %p1924_p4 = pneg %p1923_p1 }
 0x3c0   : > { %p1929_p5 = pnand %p1928_p0, %p1924_p4 }
 0x3c2   : > { %1932 = shalt.err (!%p1929_p5)
}
 0x3c3   : > { %1522 = dma.vmem_to_hbm [thread:$0]  (%p3114_p2), %s1193_s23, 128, %s1190_s26, %s1166_s0  }
 0x3c4 PF: > { %s3117_s25 = sld [smem:[#allocation33_spill]]  ;;  %p1546_p10 = scmp.ge.s32.totalorder %s2063_s18, 2 }
 0x3c5   : > { %s1204_s11 = sand.u32 1, %s2011_s27  }
 0x3c6   : > { %s1205_s20 = scalar_lea.sflag [#allocation6], %s1204_s11 }
 0x3ca   : > { %p3118_p7 = scmp.ne.s32.totalorder %s3117_s25, 0 }
 0x3cc   : > { %p1539_p12 = pnand %p1546_p10, %p3118_p7 }
 0x3ce   : > { %p1540_p6 = pneg %p1539_p12 }
 0x3d0   : > { %2002 = dma.done.wait (%p1540_p6), %s1205_s20, 128  }
 0x3d1   : > { %2004 = vsyncadd (%p1540_p6), %s1205_s20, 4294967168  ;;  %s1214_s24 = scalar_lea.sflag [#allocation14], %s1204_s11 }
 0x3d2   : > { %2006 = dma.done.wait (%p1540_p6), %s1214_s24, 128  }
 0x3d3   : > { %2008 = vsyncadd (%p1540_p6), %s1214_s24, 4294967168  ;;  %s34_s18 = sadd.s32 1, %s2063_s18   ;;  %s3120_s16 = sld [smem:[#allocation20_spill]] }
 0x3d4   : > { %p2955_p8 = scmp.ge.s32.totalorder %s34_s18, 6   ;;  %s3121_s29 = sld [smem:[#allocation31_spill]] }
 0x3d5   : > { %s3122_s30 = sld [smem:[#allocation21_spill]]  ;;  %s3130_s27 = smov %s2015_s28 }
 0x3d6   : > { %s3123_s19 = sld [smem:[#allocation32_spill]]  ;;  %s3132_s9 = smov %s2031_s10 }
 0x3d7   : > { %s3124_s1 = sld [smem:[#allocation22_spill]]  ;;  %s3134_s11 = smov %s2039_s12 }
 0x3d8   : > { %s3125_s13 = sld [smem:[#allocation30_spill]] }
 0x3d9   : > { %s3126_s14 = sld [smem:[#allocation25_spill]]  ;;  %s3131_s28 = smov %s3120_s16 }
 0x3da   : > { %s3127_s15 = sld [smem:[#allocation26_spill]] }
 0x3db   : > { %s3128_s26 = sld [smem:[#allocation27_spill]] }
 0x3dc   : > { %s3129_s17 = sld [smem:[#allocation29_spill]]  ;;  %s3133_s10 = smov %s3123_s19 }
 0x3dd   : > { %s3135_s12 = smov %s3124_s1  ;;  %33 = sbr.rel (!%p2955_p8) target bundleno = 24 (0x18), region = 164 }
 0x3e1   : > { %s3136_s16 = smov %s3128_s26 }
 0x3e2   :  { %1219 = vsyncpa [#allocation5], 1 }
 0x3e3   :  { %1221 = vsyncpa [#allocation5 + $0x1], 1 }
 0x3e4   :  { %1222 = vsyncpa [#allocation8], 1 }
 0x3e5   :  { %1224 = vsyncpa [#allocation8 + $0x1], 1 }
 0x3e6   :  { %1225 = vsyncpa [#allocation11], 1 }
 0x3e7   :  { %1227 = vsyncpa [#allocation11 + $0x1], 1 }
 0x3e8   :  { %1228 = vsyncpa [#allocation6], 1 }
 0x3e9   :  { %1230 = vsyncpa [#allocation6 + $0x1], 1 }
 0x3ea   :  { %1231 = vsyncpa [#allocation14], 1 }
 0x3eb   :  { %1233 = vsyncpa [#allocation14 + $0x1], 1 }

</bundles_post_ra>
